<compile_context>
chip_gen: v7x
topology: tpu7x:2x2x1
jax: 0.10.0
libtpu: 0.0.40
codegen_flags: <defaults>
</compile_context>

<pallas_src>
import numpy as np
import jax
import jax.numpy as jnp
from jax.experimental import pallas as pl

# ----------------------------- configuration -------------------------------
B = 2          # batch
C_IN = 3       # image channels
H_IMG = 32     # image height
W_IMG = 32     # image width
PATCH = 8      # patch size -> embedding grid 4x4
C_EMB = 32     # SAM embed dim (scaled down)
NUM_MASK_TOKENS = 4
C_UP1 = 16     # first upscale channels
C_UP2 = 8      # second upscale channels (hypernetwork output dim)

GH = H_IMG // PATCH          # 4
GW = W_IMG // PATCH          # 4
HW = GH * GW                 # 16 image tokens per batch
HL = 4 * GH                  # low-res mask height (16)
WL = 4 * GW                  # low-res mask width  (16)
N_TOK = 1 + NUM_MASK_TOKENS + 2   # [iou] + mask tokens + 2 box corners = 7
BHW = B * HW                 # 32 (batch folded into rows)
BTOK = B * N_TOK             # 14
SCALE = float(C_EMB) ** -0.5
NEG = -1.0e9                 # additive mask for cross-batch attention scores


# ------------------- static (parameter-independent) constants ---------------
def _bilinear_matrix_np(out_size, in_size):
    """Rows of bilinear (align_corners=False) interpolation weights."""
    i = np.arange(out_size, dtype=np.float64)
    src = np.maximum((i + 0.5) * (in_size / out_size) - 0.5, 0.0)
    i0 = np.minimum(np.floor(src).astype(np.int64), in_size - 1)
    i1 = np.minimum(i0 + 1, in_size - 1)
    frac = (src - i0).astype(np.float32)
    a = np.zeros((out_size, in_size), np.float32)
    a[np.arange(out_size), i0] += (1.0 - frac)
    a[np.arange(out_size), i1] += frac
    return a   # entries in {0, 0.25, 0.75, 1.0} for 16 -> 32: bf16-exact


# --- block-diagonal attention masks (keep batches independent when folded) ---
_MASK_TI = np.full((BTOK, BHW), NEG, np.float32)     # tokens -> image
_MASK_IT = np.full((BHW, BTOK), NEG, np.float32)     # image  -> tokens
for _b in range(B):
    _MASK_TI[_b * N_TOK:(_b + 1) * N_TOK, _b * HW:(_b + 1) * HW] = 0.0
    _MASK_IT[_b * HW:(_b + 1) * HW, _b * N_TOK:(_b + 1) * N_TOK] = 0.0

# --- mask-token selection / broadcast helpers (batched, 0/1 constants) -------
_SELB = np.zeros((B, BTOK), np.float32)              # picks mask-token 0 per batch
for _b in range(B):
    _SELB[_b, _b * N_TOK + 1] = 1.0
_RB = np.kron(np.eye(B, dtype=np.float32), np.ones((HW, 1), np.float32))  # (32, 2)
_TREP16 = np.tile(np.eye(C_UP2, dtype=np.float32), (1, 16))               # (8, 128)
_SUMC = np.kron(np.eye(16, dtype=np.float32),
                np.ones((C_UP2, 1), np.float32))                          # (128, 16)

# --- token-layout (row = 4i+j) -> spatial low-res layout constants -----------
# t2 columns are indexed k2*C_UP2 + c with k2 = 8*di + 4*dj + 2*dr + ds; the
# low-res pixel is (4i + a, 4j + b) with a = 2*di + dr, b = 2*dj + ds.
_K2 = np.arange(16)
_A_OF = 2 * ((_K2 >> 3) & 1) + ((_K2 >> 1) & 1)
_B_OF = 2 * ((_K2 >> 2) & 1) + (_K2 & 1)

_EXPAND16 = np.tile(np.eye(HW, dtype=np.float32), (1, GW))                # (16, 64)
_MASKJ = np.tile(np.kron(np.eye(GW, dtype=np.float32),
                         np.ones((1, 16), np.float32)), (B * GH, 1))      # (32, 64)
_P_B = np.kron(np.eye(B * GH, dtype=np.float32),
               np.ones((1, GW), np.float32))                              # (8, 32)
_RREP_B = np.kron(np.eye(B * GH, dtype=np.float32),
                  np.ones((GH, 1), np.float32))                           # (32, 8)

_AMASK_BLK = np.zeros((4, GW * 16), np.float32)
for _a in range(4):
    _AMASK_BLK[_a, :] = np.tile((_A_OF == _a).astype(np.float32), GW)
_AMASK = np.tile(_AMASK_BLK, (B * GH, 1))                                 # (32, 64)

_CCOLLAPSE = np.zeros((GW * 16, WL), np.float32)
for _jj in range(GW):
    for _k2v in range(16):
        _CCOLLAPSE[_jj * 16 + _k2v, 4 * _jj + _B_OF[_k2v]] = 1.0          # (64, 16)

# --- separable bilinear resize constants (batched via block-diag rows) -------
_AH = _bilinear_matrix_np(H_IMG, HL)                                      # (32, 16)
_AWT = _bilinear_matrix_np(W_IMG, WL).T                                   # (16, 32)
_AH_B = np.kron(np.eye(B, dtype=np.float32), _AH)                         # (64, 32)


# ---------------------------- slab layouts ----------------------------------
def _build_layout(shapes, align):
    layout, off = {}, 0
    for name, (r, c) in shapes.items():
        layout[name] = (off, r, c)
        off += -(-r // align) * align
    return layout, off


_W_SHAPES = {   # bf16 matmul operands (weights + exact 0/1 / bilinear constants)
    "w_patch": (PATCH * PATCH * C_IN, C_EMB),
    "w_mlp1": (C_EMB, 4 * C_EMB),
    "w_mlp2": (4 * C_EMB, C_EMB),
    "w_neck": (C_EMB, C_EMB),
    "w_tok1": (C_EMB, 2 * C_EMB),
    "w_tok2": (2 * C_EMB, C_EMB),
    "w_hyp1": (C_EMB, C_EMB),
    "w_hyp2": (C_EMB, C_UP2),
    "w_up1": (C_EMB, 4 * C_UP1),
    "w2_big": (4 * C_UP1, 16 * C_UP2),
    "trep16": (C_UP2, 16 * C_UP2),
    "sumc": (16 * C_UP2, 16),
    "expand16": (HW, GW * 16),
    "ccollapse": (GW * 16, WL),
    "awt": (WL, W_IMG),
    "selb": (B, BTOK),
    "rb": (BHW, B),
    "p_b": (B * GH, BHW),
    "rrep_b": (B * HL, B * GH),
    "ah_b": (B * H_IMG, B * HL),
}
_W_LAYOUT, _W_ROWS = _build_layout(_W_SHAPES, 16)   # bf16 tile = (16, 128)

_F_SHAPES = {   # f32 additive biases / positional embeds / elementwise masks
    "bpos": (BHW, C_EMB),
    "pos": (BHW, C_EMB),
    "b_mlp1": (1, 4 * C_EMB),
    "b_mlp2": (1, C_EMB),
    "b_src": (1, C_EMB),
    "b_tok1": (1, 2 * C_EMB),
    "b_tok2": (1, C_EMB),
    "b_hyp1": (1, C_EMB),
    "b_hyp2": (1, C_UP2),
    "b_up1": (1, 4 * C_UP1),
    "b2_big": (1, 16 * C_UP2),
    "mask_ti": (BTOK, BHW),
    "mask_it": (BHW, BTOK),
    "maskj": (BHW, GW * 16),
    "amask": (B * HL, GW * 16),
}
_F_LAYOUT, _F_ROWS = _build_layout(_F_SHAPES, 8)     # f32 tile = (8, 128)


# ------------------------------ fused Pallas kernel -------------------------
def _medsam_kernel(xp_ref, tok_ref, w_ref, f_ref, o_ref):
    f32 = jnp.float32
    bf16 = jnp.bfloat16

    def W(name):                       # static slice from bf16 slab
        off, r, c = _W_LAYOUT[name]
        return w_ref[off:off + r, 0:c]

    def F(name):                       # static slice from f32 slab
        off, r, c = _F_LAYOUT[name]
        return f_ref[off:off + r, 0:c]

    def mm(a, b):                      # bf16 operands, f32 accumulation (1 MXU pass)
        return jnp.dot(a.astype(bf16), b.astype(bf16), preferred_element_type=f32)

    def mm_nt(a, b):                   # a @ b.T, bf16 operands, f32 accumulation
        return jax.lax.dot_general(
            a.astype(bf16), b.astype(bf16),
            dimension_numbers=(((1,), (1,)), ((), ())),
            preferred_element_type=f32)

    def gelu(x):                       # tanh-approx GELU, f32 (EUP tanh)
        return 0.5 * x * (1.0 + jnp.tanh(0.7978845608028654 *
                                         (x + 0.044715 * x * x * x)))

    def softmax(s):                    # rows already carry -1e9 cross-batch mask
        m = jnp.max(s, axis=-1, keepdims=True)
        e = jnp.exp(s - m)
        return e * pl.reciprocal(jnp.sum(e, axis=-1, keepdims=True), approx=True)

    # ---------------- image encoder (batch folded: B*HW = 32 rows) ----------
    x = xp_ref[...]                                          # (32, 192)
    emb = mm(x, W("w_patch")) + F("bpos")                    # patch embed + pos
    h = gelu(mm(emb, W("w_mlp1")) + F("b_mlp1"))             # (32, 128)
    emb = emb + mm(h, W("w_mlp2")) + F("b_mlp2")             # residual MLP
    src = mm(emb, W("w_neck")) + F("b_src")                  # neck + no_mask prompt

    # ---------------- mask decoder: two-way attention -----------------------
    pos = F("pos")                                           # dense PE (32, 32)
    kq = src + pos
    tok = tok_ref[...]                                       # (14, 32)
    p1 = softmax(mm_nt(tok * SCALE, kq) + F("mask_ti"))      # tokens -> image
    tok = tok + mm(p1, src)
    th = gelu(mm(tok, W("w_tok1")) + F("b_tok1"))
    tok = tok + mm(th, W("w_tok2")) + F("b_tok2")
    p2 = softmax(mm_nt(kq * SCALE, tok) + F("mask_it"))      # image -> tokens
    src = src + mm(p2, tok)                                  # (32, 32)
    # TODO(synk): full SAM TwoWayTransformer has 2 layers + multi-head attention;
    #             a single-head single-layer stand-in is used here (as before).

    # ---------------- hypernetwork on mask token 0 --------------------------
    hh = gelu(mm(tok, W("w_hyp1")) + F("b_hyp1"))
    hyp = mm(hh, W("w_hyp2")) + F("b_hyp2")                  # (14, 8)
    h0 = mm(W("selb"), hyp)                                  # (B, 8)

    # ---- upscales (transposed conv k=2 s=2): one channel matmul each -------
    t1 = gelu(mm(src, W("w_up1")) + F("b_up1"))              # (32, 64)
    t2 = gelu(mm(t1, W("w2_big")) + F("b2_big"))             # (32, 128)

    # ---------------- hypernetwork mask product (token layout) --------------
    h0rep = mm(W("rb"), mm(h0, W("trep16")))                 # (32, 128)
    mscore = mm(t2 * h0rep, W("sumc"))                       # (32, 16)

    # ---- token layout -> spatial low-res layout (0/1 matmuls + masks) ------
    w1 = mm(W("p_b"), mm(mscore, W("expand16")) * F("maskj"))    # (8, 64)
    xr = mm(W("rrep_b"), w1)                                     # (32, 64)
    m_low = mm(xr * F("amask"), W("ccollapse"))                  # (32, 16)

    # ---------------- separable bilinear resize (batched) --------------------
    o_ref[...] = mm(W("ah_b"), mm(m_low, W("awt")))              # (64, 32)


# ------------------------------ parameter init ------------------------------
def init_params(seed=42):
    key = jax.random.PRNGKey(seed)
    ks = iter(jax.random.split(key, 32))

    def nrm(shape, scale=0.05):
        return scale * jax.random.normal(next(ks), shape, jnp.float32)

    p = {}
    # image encoder
    p["w_patch"] = nrm((PATCH * PATCH * C_IN, C_EMB))
    p["b_patch"] = nrm((C_EMB,))
    p["pos_embed"] = nrm((HW, C_EMB))
    p["w_mlp1"] = nrm((C_EMB, 4 * C_EMB))
    p["b_mlp1"] = nrm((4 * C_EMB,))
    p["w_mlp2"] = nrm((4 * C_EMB, C_EMB))
    p["b_mlp2"] = nrm((C_EMB,))
    p["w_neck"] = nrm((C_EMB, C_EMB))
    p["b_neck"] = nrm((C_EMB,))
    # prompt encoder (frozen in MedSAM)
    p["pe_gaussian"] = jax.random.normal(next(ks), (2, C_EMB // 2), jnp.float32)
    p["point_emb_2"] = nrm((C_EMB,))   # box top-left corner embedding
    p["point_emb_3"] = nrm((C_EMB,))   # box bottom-right corner embedding
    p["no_mask_embed"] = nrm((C_EMB,))
    # mask decoder
    p["iou_token"] = nrm((1, C_EMB))
    p["mask_tokens"] = nrm((NUM_MASK_TOKENS, C_EMB))
    p["w_tok1"] = nrm((C_EMB, 2 * C_EMB))
    p["b_tok1"] = nrm((2 * C_EMB,))
    p["w_tok2"] = nrm((2 * C_EMB, C_EMB))
    p["b_tok2"] = nrm((C_EMB,))
    p["w_up1"] = nrm((C_EMB, C_UP1 * 4))     # transposed-conv 2x2 s2 as matmul
    p["b_up1"] = nrm((C_UP1 * 4,))
    p["w_up2"] = nrm((C_UP1, C_UP2 * 4))
    p["b_up2"] = nrm((C_UP2 * 4,))
    p["w_hyp1"] = nrm((C_EMB, C_EMB))
    p["b_hyp1"] = nrm((C_EMB,))
    p["w_hyp2"] = nrm((C_EMB, C_UP2))
    p["b_hyp2"] = nrm((C_UP2,))
    p["w_iou"] = nrm((C_EMB, NUM_MASK_TOKENS))   # iou head: discarded by forward
    p["b_iou"] = nrm((NUM_MASK_TOKENS,))
    return p


# --------------------- frozen prompt encoder (tiny, plain JAX) ---------------
def _pe_encoding(coords, gaussian):
    coords = 2.0 * coords - 1.0
    coords = coords @ gaussian
    coords = 2.0 * jnp.pi * coords
    return jnp.concatenate([jnp.sin(coords), jnp.cos(coords)], axis=-1)


def _prompt_sparse(box, p):
    coords = box.astype(jnp.float32).reshape(-1, 2, 2) + 0.5       # (B, 2, 2)
    coords = coords / jnp.array([W_IMG, H_IMG], jnp.float32)
    corner = _pe_encoding(coords, p["pe_gaussian"])                # (B, 2, C)
    corner = corner.at[:, 0, :].add(p["point_emb_2"])
    corner = corner.at[:, 1, :].add(p["point_emb_3"])
    return corner


def _dense_pe(p):
    ys = (jnp.arange(GH, dtype=jnp.float32) + 0.5) / GH
    xs = (jnp.arange(GW, dtype=jnp.float32) + 0.5) / GW
    gy, gx = jnp.meshgrid(ys, xs, indexing="ij")
    coords = jnp.stack([gx, gy], axis=-1)                          # (GH, GW, 2)
    return _pe_encoding(coords, p["pe_gaussian"]).reshape(HW, C_EMB)


# --------------------- one-time prep: pack everything into 2 slabs ----------
def prepare_params(p):
    """Hoisted out of the per-call path: dense PE, bias folds, block-diag /
    kron constants, bf16 casts and slab packing all happen exactly once."""
    f32 = jnp.float32

    pos = _dense_pe(p)                                        # (HW, C)
    bpos = p["pos_embed"] + p["b_patch"][None, :]             # patch bias + pos
    b_src = (p["b_neck"] + p["no_mask_embed"])[None, :]       # neck bias + dense prompt
    w2_big = jnp.kron(jnp.eye(4, dtype=f32), p["w_up2"])      # (64, 128) blockdiag
    b2_big = jnp.tile(p["b_up2"], 4)[None, :]                 # (1, 128)

    w_entries = {
        "w_patch": p["w_patch"], "w_mlp1": p["w_mlp1"], "w_mlp2": p["w_mlp2"],
        "w_neck": p["w_neck"], "w_tok1": p["w_tok1"], "w_tok2": p["w_tok2"],
        "w_hyp1": p["w_hyp1"], "w_hyp2": p["w_hyp2"], "w_up1": p["w_up1"],
        "w2_big": w2_big,
        "trep16": jnp.asarray(_TREP16), "sumc": jnp.asarray(_SUMC),
        "expand16": jnp.asarray(_EXPAND16), "ccollapse": jnp.asarray(_CCOLLAPSE),
        "awt": jnp.asarray(_AWT), "selb": jnp.asarray(_SELB),
        "rb": jnp.asarray(_RB), "p_b": jnp.asarray(_P_B),
        "rrep_b": jnp.asarray(_RREP_B), "ah_b": jnp.asarray(_AH_B),
    }
    f_entries = {
        "bpos": jnp.tile(bpos, (B, 1)), "pos": jnp.tile(pos, (B, 1)),
        "b_mlp1": p["b_mlp1"][None, :], "b_mlp2": p["b_mlp2"][None, :],
        "b_src": b_src,
        "b_tok1": p["b_tok1"][None, :], "b_tok2": p["b_tok2"][None, :],
        "b_hyp1": p["b_hyp1"][None, :], "b_hyp2": p["b_hyp2"][None, :],
        "b_up1": p["b_up1"][None, :], "b2_big": b2_big,
        "mask_ti": jnp.asarray(_MASK_TI), "mask_it": jnp.asarray(_MASK_IT),
        "maskj": jnp.asarray(_MASKJ), "amask": jnp.asarray(_AMASK),
    }

    def pack(entries, layout, rows, dtype):
        slab = jnp.zeros((rows, 128), dtype)
        for name, arr in entries.items():
            off, r, c = layout[name]
            assert tuple(arr.shape) == (r, c), (name, arr.shape, (r, c))
            slab = slab.at[off:off + r, 0:c].set(arr.astype(dtype))
        return slab

    return {
        "wslab": pack(w_entries, _W_LAYOUT, _W_ROWS, jnp.bfloat16),
        "fslab": pack(f_entries, _F_LAYOUT, _F_ROWS, jnp.float32),
        "out_tok": jnp.concatenate([p["iou_token"], p["mask_tokens"]], 0),
        "pe_gaussian": p["pe_gaussian"],
        "point_emb_2": p["point_emb_2"],
        "point_emb_3": p["point_emb_3"],
    }


# --------------------------------- MedSAM -----------------------------------
def medsam_forward(image, box, prep):
    """image: (B, C_IN, H, W) NCHW; box: (B, 4) -> masks (B, 1, H, W)."""
    b = image.shape[0]
    assert b == B, "kernel constants are specialized to the configured batch"

    # input-layout glue: NCHW patchify, batch folded into rows
    xp = image.reshape(b, C_IN, GH, PATCH, GW, PATCH)
    xp = xp.transpose(0, 2, 4, 3, 5, 1).reshape(b * HW, PATCH * PATCH * C_IN)

    # frozen prompt encoder (tiny): box-corner Fourier PE tokens, per call
    sparse = _prompt_sparse(box, prep)                             # (B, 2, C)
    tokens = jnp.concatenate(
        [jnp.broadcast_to(prep["out_tok"][None], (b, 1 + NUM_MASK_TOKENS, C_EMB)),
         sparse], axis=1).reshape(b * N_TOK, C_EMB)                # (B*N_TOK, C)

    out = pl.pallas_call(
        _medsam_kernel,
        out_shape=jax.ShapeDtypeStruct((b * H_IMG, W_IMG), jnp.float32),
        cost_estimate=pl.CostEstimate(
            flops=2_500_000, transcendentals=16_000, bytes_accessed=450_000),
    )(xp, tokens, prep["wslab"], prep["fslab"])
    # TODO(synk): output last dim is 32 (< 128 lanes) -> masked stores; low
    #             priority per review (4 KiB output).

    return out.reshape(b, 1, H_IMG, W_IMG)


# ----------------------------------- main ------------------------------------
if __name__ == "__main__":
    params = init_params(seed=42)
    prep = prepare_params(params)   # one-time packing, outside the jitted forward

    key = jax.random.PRNGKey(0)
    k_img, _ = jax.random.split(key)
    image = jax.random.normal(k_img, (B, C_IN, H_IMG, W_IMG), jnp.float32)
    box = jnp.stack(
        [jnp.array([4.0, 4.0, 28.0, 28.0], jnp.float32),
         jnp.array([2.0, 6.0, 20.0, 30.0], jnp.float32)],
        axis=0,
    )  # (B, 4)

    fwd = jax.jit(medsam_forward)
    masks = jax.block_until_ready(fwd(image, box, prep))

    assert masks.shape == (B, 1, H_IMG, W_IMG), masks.shape
    assert masks.dtype == jnp.float32
    assert bool(jnp.all(jnp.isfinite(masks)))
    print("KERNEL_OK")
</pallas_src>

<mosaic_0001>
module attributes {stable_mosaic.version = 11 : i64} {
  func.func @_medsam_kernel(%arg0: memref<32x192xf32, #tpu.memory_space<vmem>>, %arg1: memref<14x32xf32, #tpu.memory_space<vmem>>, %arg2: memref<1040x128xbf16, #tpu.memory_space<vmem>>, %arg3: memref<248x128xf32, #tpu.memory_space<vmem>>, %arg4: memref<64x32xf32, #tpu.memory_space<vmem>>) attributes {dimension_semantics = [], scalar_prefetch = 0 : i64, scratch_operands = 0 : i64, tpu.core_type = #tpu.core_type<tc>} {
    %c0 = arith.constant 0 : index
    %c0_0 = arith.constant 0 : index
    %0 = vector.load %arg0[%c0, %c0_0] : memref<32x192xf32, #tpu.memory_space<vmem>>, vector<32x192xf32>
    %c0_1 = arith.constant 0 : index
    %c0_2 = arith.constant 0 : index
    %1 = vector.load %arg2[%c0_1, %c0_2] : memref<1040x128xbf16, #tpu.memory_space<vmem>>, vector<192x32xbf16>
    %2 = arith.truncf %0 : vector<32x192xf32> to vector<32x192xbf16>
    %cst = arith.constant dense<0.000000e+00> : vector<32x32xf32>
    %3 = tpu.matmul %2, %1, %cst {dimension_numbers = #tpu.dot_dimension_numbers<[1], [0], [0], [1], [0, 0, 1, 1], [], []>} : vector<32x192xbf16>, vector<192x32xbf16>, vector<32x32xf32> -> vector<32x32xf32>
    %c0_3 = arith.constant 0 : index
    %c0_4 = arith.constant 0 : index
    %4 = vector.load %arg3[%c0_3, %c0_4] : memref<248x128xf32, #tpu.memory_space<vmem>>, vector<32x32xf32>
    %5 = arith.addf %3, %4 : vector<32x32xf32>
    %c192 = arith.constant 192 : index
    %c0_5 = arith.constant 0 : index
    %6 = vector.load %arg2[%c192, %c0_5] : memref<1040x128xbf16, #tpu.memory_space<vmem>>, vector<32x128xbf16>
    %7 = arith.truncf %5 : vector<32x32xf32> to vector<32x32xbf16>
    %cst_6 = arith.constant dense<0.000000e+00> : vector<32x128xf32>
    %8 = tpu.matmul %7, %6, %cst_6 {dimension_numbers = #tpu.dot_dimension_numbers<[1], [0], [0], [1], [0, 0, 1, 1], [], []>} : vector<32x32xbf16>, vector<32x128xbf16>, vector<32x128xf32> -> vector<32x128xf32>
    %c64 = arith.constant 64 : index
    %c0_7 = arith.constant 0 : index
    %9 = vector.load %arg3[%c64, %c0_7] : memref<248x128xf32, #tpu.memory_space<vmem>>, vector<1x128xf32>
    %10 = vector.broadcast %9 : vector<1x128xf32> to vector<32x128xf32>
    %11 = arith.addf %8, %10 : vector<32x128xf32>
    %cst_8 = arith.constant 5.000000e-01 : f32
    %12 = vector.broadcast %cst_8 : f32 to vector<32x128xf32>
    %13 = arith.mulf %12, %11 : vector<32x128xf32>
    %cst_9 = arith.constant 4.471500e-02 : f32
    %14 = vector.broadcast %cst_9 : f32 to vector<32x128xf32>
    %15 = arith.mulf %14, %11 : vector<32x128xf32>
    %16 = arith.mulf %15, %11 : vector<32x128xf32>
    %17 = arith.mulf %16, %11 : vector<32x128xf32>
    %18 = arith.addf %11, %17 : vector<32x128xf32>
    %cst_10 = arith.constant 0.797884583 : f32
    %19 = vector.broadcast %cst_10 : f32 to vector<32x128xf32>
    %20 = arith.mulf %19, %18 : vector<32x128xf32>
    %21 = math.tanh %20 : vector<32x128xf32>
    %cst_11 = arith.constant 1.000000e+00 : f32
    %22 = vector.broadcast %cst_11 : f32 to vector<32x128xf32>
    %23 = arith.addf %22, %21 : vector<32x128xf32>
    %24 = arith.mulf %13, %23 : vector<32x128xf32>
    %c224 = arith.constant 224 : index
    %c0_12 = arith.constant 0 : index
    %25 = vector.load %arg2[%c224, %c0_12] : memref<1040x128xbf16, #tpu.memory_space<vmem>>, vector<128x32xbf16>
    %26 = arith.truncf %24 : vector<32x128xf32> to vector<32x128xbf16>
    %cst_13 = arith.constant dense<0.000000e+00> : vector<32x32xf32>
    %27 = tpu.matmul %26, %25, %cst_13 {dimension_numbers = #tpu.dot_dimension_numbers<[1], [0], [0], [1], [0, 0, 1, 1], [], []>} : vector<32x128xbf16>, vector<128x32xbf16>, vector<32x32xf32> -> vector<32x32xf32>
    %28 = arith.addf %5, %27 : vector<32x32xf32>
    %c72 = arith.constant 72 : index
    %c0_14 = arith.constant 0 : index
    %29 = vector.load %arg3[%c72, %c0_14] : memref<248x128xf32, #tpu.memory_space<vmem>>, vector<1x32xf32>
    %30 = vector.broadcast %29 : vector<1x32xf32> to vector<32x32xf32>
    %31 = arith.addf %28, %30 : vector<32x32xf32>
    %c352 = arith.constant 352 : index
    %c0_15 = arith.constant 0 : index
    %32 = vector.load %arg2[%c352, %c0_15] : memref<1040x128xbf16, #tpu.memory_space<vmem>>, vector<32x32xbf16>
    %33 = arith.truncf %31 : vector<32x32xf32> to vector<32x32xbf16>
    %cst_16 = arith.constant dense<0.000000e+00> : vector<32x32xf32>
    %34 = tpu.matmul %33, %32, %cst_16 {dimension_numbers = #tpu.dot_dimension_numbers<[1], [0], [0], [1], [0, 0, 1, 1], [], []>} : vector<32x32xbf16>, vector<32x32xbf16>, vector<32x32xf32> -> vector<32x32xf32>
    %c80 = arith.constant 80 : index
    %c0_17 = arith.constant 0 : index
    %35 = vector.load %arg3[%c80, %c0_17] : memref<248x128xf32, #tpu.memory_space<vmem>>, vector<1x32xf32>
    %36 = vector.broadcast %35 : vector<1x32xf32> to vector<32x32xf32>
    %37 = arith.addf %34, %36 : vector<32x32xf32>
    %c32 = arith.constant 32 : index
    %c0_18 = arith.constant 0 : index
    %38 = vector.load %arg3[%c32, %c0_18] : memref<248x128xf32, #tpu.memory_space<vmem>>, vector<32x32xf32>
    %39 = arith.addf %37, %38 : vector<32x32xf32>
    %c0_19 = arith.constant 0 : index
    %c0_20 = arith.constant 0 : index
    %40 = vector.load %arg1[%c0_19, %c0_20] : memref<14x32xf32, #tpu.memory_space<vmem>>, vector<14x32xf32>
    %cst_21 = arith.constant 0.176776692 : f32
    %41 = vector.broadcast %cst_21 : f32 to vector<14x32xf32>
    %42 = arith.mulf %40, %41 : vector<14x32xf32>
    %43 = arith.truncf %42 : vector<14x32xf32> to vector<14x32xbf16>
    %44 = arith.truncf %39 : vector<32x32xf32> to vector<32x32xbf16>
    %cst_22 = arith.constant dense<0.000000e+00> : vector<14x32xf32>
    %45 = tpu.matmul %43, %44, %cst_22 {dimension_numbers = #tpu.dot_dimension_numbers<[1], [1], [0], [0], [0, 0, 1, 0], [], []>} : vector<14x32xbf16>, vector<32x32xbf16>, vector<14x32xf32> -> vector<14x32xf32>
    %c136 = arith.constant 136 : index
    %c0_23 = arith.constant 0 : index
    %46 = vector.load %arg3[%c136, %c0_23] : memref<248x128xf32, #tpu.memory_space<vmem>>, vector<14x32xf32>
    %47 = arith.addf %45, %46 : vector<14x32xf32>
    %cst_24 = arith.constant dense<0xFF800000> : vector<14xf32>
    %48 = vector.multi_reduction <maximumf>, %47, %cst_24 [1] : vector<14x32xf32> to vector<14xf32>
    %49 = vector.shape_cast %48 : vector<14xf32> to vector<14x1xf32>
    %50 = vector.broadcast %49 : vector<14x1xf32> to vector<14x32xf32>
    %51 = arith.subf %47, %50 : vector<14x32xf32>
    %52 = math.exp %51 : vector<14x32xf32>
    %cst_25 = arith.constant dense<0.000000e+00> : vector<14xf32>
    %53 = vector.multi_reduction <add>, %52, %cst_25 [1] : vector<14x32xf32> to vector<14xf32>
    %54 = vector.shape_cast %53 : vector<14xf32> to vector<14x1xf32>
    %55 = tpu.reciprocal %54 {approx = true} : vector<14x1xf32> -> vector<14x1xf32>
    %56 = vector.broadcast %55 : vector<14x1xf32> to vector<14x32xf32>
    %57 = arith.mulf %52, %56 : vector<14x32xf32>
    %58 = arith.truncf %57 : vector<14x32xf32> to vector<14x32xbf16>
    %59 = arith.truncf %37 : vector<32x32xf32> to vector<32x32xbf16>
    %cst_26 = arith.constant dense<0.000000e+00> : vector<14x32xf32>
    %60 = tpu.matmul %58, %59, %cst_26 {dimension_numbers = #tpu.dot_dimension_numbers<[1], [0], [0], [1], [0, 0, 1, 1], [], []>} : vector<14x32xbf16>, vector<32x32xbf16>, vector<14x32xf32> -> vector<14x32xf32>
    %61 = arith.addf %40, %60 : vector<14x32xf32>
    %c384 = arith.constant 384 : index
    %c0_27 = arith.constant 0 : index
    %62 = vector.load %arg2[%c384, %c0_27] : memref<1040x128xbf16, #tpu.memory_space<vmem>>, vector<32x64xbf16>
    %63 = arith.truncf %61 : vector<14x32xf32> to vector<14x32xbf16>
    %cst_28 = arith.constant dense<0.000000e+00> : vector<14x64xf32>
    %64 = tpu.matmul %63, %62, %cst_28 {dimension_numbers = #tpu.dot_dimension_numbers<[1], [0], [0], [1], [0, 0, 1, 1], [], []>} : vector<14x32xbf16>, vector<32x64xbf16>, vector<14x64xf32> -> vector<14x64xf32>
    %c88 = arith.constant 88 : index
    %c0_29 = arith.constant 0 : index
    %65 = vector.load %arg3[%c88, %c0_29] : memref<248x128xf32, #tpu.memory_space<vmem>>, vector<1x64xf32>
    %66 = vector.broadcast %65 : vector<1x64xf32> to vector<14x64xf32>
    %67 = arith.addf %64, %66 : vector<14x64xf32>
    %cst_30 = arith.constant 5.000000e-01 : f32
    %68 = vector.broadcast %cst_30 : f32 to vector<14x64xf32>
    %69 = arith.mulf %68, %67 : vector<14x64xf32>
    %cst_31 = arith.constant 4.471500e-02 : f32
    %70 = vector.broadcast %cst_31 : f32 to vector<14x64xf32>
    %71 = arith.mulf %70, %67 : vector<14x64xf32>
    %72 = arith.mulf %71, %67 : vector<14x64xf32>
    %73 = arith.mulf %72, %67 : vector<14x64xf32>
    %74 = arith.addf %67, %73 : vector<14x64xf32>
    %cst_32 = arith.constant 0.797884583 : f32
    %75 = vector.broadcast %cst_32 : f32 to vector<14x64xf32>
    %76 = arith.mulf %75, %74 : vector<14x64xf32>
    %77 = math.tanh %76 : vector<14x64xf32>
    %cst_33 = arith.constant 1.000000e+00 : f32
    %78 = vector.broadcast %cst_33 : f32 to vector<14x64xf32>
    %79 = arith.addf %78, %77 : vector<14x64xf32>
    %80 = arith.mulf %69, %79 : vector<14x64xf32>
    %c416 = arith.constant 416 : index
    %c0_34 = arith.constant 0 : index
    %81 = vector.load %arg2[%c416, %c0_34] : memref<1040x128xbf16, #tpu.memory_space<vmem>>, vector<64x32xbf16>
    %82 = arith.truncf %80 : vector<14x64xf32> to vector<14x64xbf16>
    %cst_35 = arith.constant dense<0.000000e+00> : vector<14x32xf32>
    %83 = tpu.matmul %82, %81, %cst_35 {dimension_numbers = #tpu.dot_dimension_numbers<[1], [0], [0], [1], [0, 0, 1, 1], [], []>} : vector<14x64xbf16>, vector<64x32xbf16>, vector<14x32xf32> -> vector<14x32xf32>
    %84 = arith.addf %61, %83 : vector<14x32xf32>
    %c96 = arith.constant 96 : index
    %c0_36 = arith.constant 0 : index
    %85 = vector.load %arg3[%c96, %c0_36] : memref<248x128xf32, #tpu.memory_space<vmem>>, vector<1x32xf32>
    %86 = vector.broadcast %85 : vector<1x32xf32> to vector<14x32xf32>
    %87 = arith.addf %84, %86 : vector<14x32xf32>
    %cst_37 = arith.constant 0.176776692 : f32
    %88 = vector.broadcast %cst_37 : f32 to vector<32x32xf32>
    %89 = arith.mulf %39, %88 : vector<32x32xf32>
    %90 = arith.truncf %89 : vector<32x32xf32> to vector<32x32xbf16>
    %91 = arith.truncf %87 : vector<14x32xf32> to vector<14x32xbf16>
    %cst_38 = arith.constant dense<0.000000e+00> : vector<32x14xf32>
    %92 = tpu.matmul %90, %91, %cst_38 {dimension_numbers = #tpu.dot_dimension_numbers<[1], [1], [0], [0], [0, 0, 1, 0], [], []>} : vector<32x32xbf16>, vector<14x32xbf16>, vector<32x14xf32> -> vector<32x14xf32>
    %c152 = arith.constant 152 : index
    %c0_39 = arith.constant 0 : index
    %93 = vector.load %arg3[%c152, %c0_39] : memref<248x128xf32, #tpu.memory_space<vmem>>, vector<32x14xf32>
    %94 = arith.addf %92, %93 : vector<32x14xf32>
    %cst_40 = arith.constant dense<0xFF800000> : vector<32xf32>
    %95 = vector.multi_reduction <maximumf>, %94, %cst_40 [1] : vector<32x14xf32> to vector<32xf32>
    %96 = vector.shape_cast %95 : vector<32xf32> to vector<32x1xf32>
    %97 = vector.broadcast %96 : vector<32x1xf32> to vector<32x14xf32>
    %98 = arith.subf %94, %97 : vector<32x14xf32>
    %99 = math.exp %98 : vector<32x14xf32>
    %cst_41 = arith.constant dense<0.000000e+00> : vector<32xf32>
    %100 = vector.multi_reduction <add>, %99, %cst_41 [1] : vector<32x14xf32> to vector<32xf32>
    %101 = vector.shape_cast %100 : vector<32xf32> to vector<32x1xf32>
    %102 = tpu.reciprocal %101 {approx = true} : vector<32x1xf32> -> vector<32x1xf32>
    %103 = vector.broadcast %102 : vector<32x1xf32> to vector<32x14xf32>
    %104 = arith.mulf %99, %103 : vector<32x14xf32>
    %105 = arith.truncf %104 : vector<32x14xf32> to vector<32x14xbf16>
    %106 = arith.truncf %87 : vector<14x32xf32> to vector<14x32xbf16>
    %cst_42 = arith.constant dense<0.000000e+00> : vector<32x32xf32>
    %107 = tpu.matmul %105, %106, %cst_42 {dimension_numbers = #tpu.dot_dimension_numbers<[1], [0], [0], [1], [0, 0, 1, 1], [], []>} : vector<32x14xbf16>, vector<14x32xbf16>, vector<32x32xf32> -> vector<32x32xf32>
    %108 = arith.addf %37, %107 : vector<32x32xf32>
    %c480 = arith.constant 480 : index
    %c0_43 = arith.constant 0 : index
    %109 = vector.load %arg2[%c480, %c0_43] : memref<1040x128xbf16, #tpu.memory_space<vmem>>, vector<32x32xbf16>
    %110 = arith.truncf %87 : vector<14x32xf32> to vector<14x32xbf16>
    %cst_44 = arith.constant dense<0.000000e+00> : vector<14x32xf32>
    %111 = tpu.matmul %110, %109, %cst_44 {dimension_numbers = #tpu.dot_dimension_numbers<[1], [0], [0], [1], [0, 0, 1, 1], [], []>} : vector<14x32xbf16>, vector<32x32xbf16>, vector<14x32xf32> -> vector<14x32xf32>
    %c104 = arith.constant 104 : index
    %c0_45 = arith.constant 0 : index
    %112 = vector.load %arg3[%c104, %c0_45] : memref<248x128xf32, #tpu.memory_space<vmem>>, vector<1x32xf32>
    %113 = vector.broadcast %112 : vector<1x32xf32> to vector<14x32xf32>
    %114 = arith.addf %111, %113 : vector<14x32xf32>
    %cst_46 = arith.constant 5.000000e-01 : f32
    %115 = vector.broadcast %cst_46 : f32 to vector<14x32xf32>
    %116 = arith.mulf %115, %114 : vector<14x32xf32>
    %cst_47 = arith.constant 4.471500e-02 : f32
    %117 = vector.broadcast %cst_47 : f32 to vector<14x32xf32>
    %118 = arith.mulf %117, %114 : vector<14x32xf32>
    %119 = arith.mulf %118, %114 : vector<14x32xf32>
    %120 = arith.mulf %119, %114 : vector<14x32xf32>
    %121 = arith.addf %114, %120 : vector<14x32xf32>
    %cst_48 = arith.constant 0.797884583 : f32
    %122 = vector.broadcast %cst_48 : f32 to vector<14x32xf32>
    %123 = arith.mulf %122, %121 : vector<14x32xf32>
    %124 = math.tanh %123 : vector<14x32xf32>
    %cst_49 = arith.constant 1.000000e+00 : f32
    %125 = vector.broadcast %cst_49 : f32 to vector<14x32xf32>
    %126 = arith.addf %125, %124 : vector<14x32xf32>
    %127 = arith.mulf %116, %126 : vector<14x32xf32>
    %c512 = arith.constant 512 : index
    %c0_50 = arith.constant 0 : index
    %128 = vector.load %arg2[%c512, %c0_50] : memref<1040x128xbf16, #tpu.memory_space<vmem>>, vector<32x8xbf16>
    %129 = arith.truncf %127 : vector<14x32xf32> to vector<14x32xbf16>
    %cst_51 = arith.constant dense<0.000000e+00> : vector<14x8xf32>
    %130 = tpu.matmul %129, %128, %cst_51 {dimension_numbers = #tpu.dot_dimension_numbers<[1], [0], [0], [1], [0, 0, 1, 1], [], []>} : vector<14x32xbf16>, vector<32x8xbf16>, vector<14x8xf32> -> vector<14x8xf32>
    %c112 = arith.constant 112 : index
    %c0_52 = arith.constant 0 : index
    %131 = vector.load %arg3[%c112, %c0_52] : memref<248x128xf32, #tpu.memory_space<vmem>>, vector<1x8xf32>
    %132 = vector.broadcast %131 : vector<1x8xf32> to vector<14x8xf32>
    %133 = arith.addf %130, %132 : vector<14x8xf32>
    %c880 = arith.constant 880 : index
    %c0_53 = arith.constant 0 : index
    %134 = vector.load %arg2[%c880, %c0_53] : memref<1040x128xbf16, #tpu.memory_space<vmem>>, vector<2x14xbf16>
    %135 = arith.truncf %133 : vector<14x8xf32> to vector<14x8xbf16>
    %cst_54 = arith.constant dense<0.000000e+00> : vector<2x8xf32>
    %136 = tpu.matmul %134, %135, %cst_54 {dimension_numbers = #tpu.dot_dimension_numbers<[1], [0], [0], [1], [0, 0, 1, 1], [], []>} : vector<2x14xbf16>, vector<14x8xbf16>, vector<2x8xf32> -> vector<2x8xf32>
    %c544 = arith.constant 544 : index
    %c0_55 = arith.constant 0 : index
    %137 = vector.load %arg2[%c544, %c0_55] : memref<1040x128xbf16, #tpu.memory_space<vmem>>, vector<32x64xbf16>
    %138 = arith.truncf %108 : vector<32x32xf32> to vector<32x32xbf16>
    %cst_56 = arith.constant dense<0.000000e+00> : vector<32x64xf32>
    %139 = tpu.matmul %138, %137, %cst_56 {dimension_numbers = #tpu.dot_dimension_numbers<[1], [0], [0], [1], [0, 0, 1, 1], [], []>} : vector<32x32xbf16>, vector<32x64xbf16>, vector<32x64xf32> -> vector<32x64xf32>
    %c120 = arith.constant 120 : index
    %c0_57 = arith.constant 0 : index
    %140 = vector.load %arg3[%c120, %c0_57] : memref<248x128xf32, #tpu.memory_space<vmem>>, vector<1x64xf32>
    %141 = vector.broadcast %140 : vector<1x64xf32> to vector<32x64xf32>
    %142 = arith.addf %139, %141 : vector<32x64xf32>
    %cst_58 = arith.constant 5.000000e-01 : f32
    %143 = vector.broadcast %cst_58 : f32 to vector<32x64xf32>
    %144 = arith.mulf %143, %142 : vector<32x64xf32>
    %cst_59 = arith.constant 4.471500e-02 : f32
    %145 = vector.broadcast %cst_59 : f32 to vector<32x64xf32>
    %146 = arith.mulf %145, %142 : vector<32x64xf32>
    %147 = arith.mulf %146, %142 : vector<32x64xf32>
    %148 = arith.mulf %147, %142 : vector<32x64xf32>
    %149 = arith.addf %142, %148 : vector<32x64xf32>
    %cst_60 = arith.constant 0.797884583 : f32
    %150 = vector.broadcast %cst_60 : f32 to vector<32x64xf32>
    %151 = arith.mulf %150, %149 : vector<32x64xf32>
    %152 = math.tanh %151 : vector<32x64xf32>
    %cst_61 = arith.constant 1.000000e+00 : f32
    %153 = vector.broadcast %cst_61 : f32 to vector<32x64xf32>
    %154 = arith.addf %153, %152 : vector<32x64xf32>
    %155 = arith.mulf %144, %154 : vector<32x64xf32>
    %c576 = arith.constant 576 : index
    %c0_62 = arith.constant 0 : index
    %156 = vector.load %arg2[%c576, %c0_62] : memref<1040x128xbf16, #tpu.memory_space<vmem>>, vector<64x128xbf16>
    %157 = arith.truncf %155 : vector<32x64xf32> to vector<32x64xbf16>
    %cst_63 = arith.constant dense<0.000000e+00> : vector<32x128xf32>
    %158 = tpu.matmul %157, %156, %cst_63 {dimension_numbers = #tpu.dot_dimension_numbers<[1], [0], [0], [1], [0, 0, 1, 1], [], []>} : vector<32x64xbf16>, vector<64x128xbf16>, vector<32x128xf32> -> vector<32x128xf32>
    %c128 = arith.constant 128 : index
    %c0_64 = arith.constant 0 : index
    %159 = vector.load %arg3[%c128, %c0_64] : memref<248x128xf32, #tpu.memory_space<vmem>>, vector<1x128xf32>
    %160 = vector.broadcast %159 : vector<1x128xf32> to vector<32x128xf32>
    %161 = arith.addf %158, %160 : vector<32x128xf32>
    %cst_65 = arith.constant 5.000000e-01 : f32
    %162 = vector.broadcast %cst_65 : f32 to vector<32x128xf32>
    %163 = arith.mulf %162, %161 : vector<32x128xf32>
    %cst_66 = arith.constant 4.471500e-02 : f32
    %164 = vector.broadcast %cst_66 : f32 to vector<32x128xf32>
    %165 = arith.mulf %164, %161 : vector<32x128xf32>
    %166 = arith.mulf %165, %161 : vector<32x128xf32>
    %167 = arith.mulf %166, %161 : vector<32x128xf32>
    %168 = arith.addf %161, %167 : vector<32x128xf32>
    %cst_67 = arith.constant 0.797884583 : f32
    %169 = vector.broadcast %cst_67 : f32 to vector<32x128xf32>
    %170 = arith.mulf %169, %168 : vector<32x128xf32>
    %171 = math.tanh %170 : vector<32x128xf32>
    %cst_68 = arith.constant 1.000000e+00 : f32
    %172 = vector.broadcast %cst_68 : f32 to vector<32x128xf32>
    %173 = arith.addf %172, %171 : vector<32x128xf32>
    %174 = arith.mulf %163, %173 : vector<32x128xf32>
    %c896 = arith.constant 896 : index
    %c0_69 = arith.constant 0 : index
    %175 = vector.load %arg2[%c896, %c0_69] : memref<1040x128xbf16, #tpu.memory_space<vmem>>, vector<32x2xbf16>
    %c640 = arith.constant 640 : index
    %c0_70 = arith.constant 0 : index
    %176 = vector.load %arg2[%c640, %c0_70] : memref<1040x128xbf16, #tpu.memory_space<vmem>>, vector<8x128xbf16>
    %177 = arith.truncf %136 : vector<2x8xf32> to vector<2x8xbf16>
    %cst_71 = arith.constant dense<0.000000e+00> : vector<2x128xf32>
    %178 = tpu.matmul %177, %176, %cst_71 {dimension_numbers = #tpu.dot_dimension_numbers<[1], [0], [0], [1], [0, 0, 1, 1], [], []>} : vector<2x8xbf16>, vector<8x128xbf16>, vector<2x128xf32> -> vector<2x128xf32>
    %179 = arith.truncf %178 : vector<2x128xf32> to vector<2x128xbf16>
    %cst_72 = arith.constant dense<0.000000e+00> : vector<32x128xf32>
    %180 = tpu.matmul %175, %179, %cst_72 {dimension_numbers = #tpu.dot_dimension_numbers<[1], [0], [0], [1], [0, 0, 1, 1], [], []>} : vector<32x2xbf16>, vector<2x128xbf16>, vector<32x128xf32> -> vector<32x128xf32>
    %181 = arith.mulf %174, %180 : vector<32x128xf32>
    %c656 = arith.constant 656 : index
    %c0_73 = arith.constant 0 : index
    %182 = vector.load %arg2[%c656, %c0_73] : memref<1040x128xbf16, #tpu.memory_space<vmem>>, vector<128x16xbf16>
    %183 = arith.truncf %181 : vector<32x128xf32> to vector<32x128xbf16>
    %cst_74 = arith.constant dense<0.000000e+00> : vector<32x16xf32>
    %184 = tpu.matmul %183, %182, %cst_74 {dimension_numbers = #tpu.dot_dimension_numbers<[1], [0], [0], [1], [0, 0, 1, 1], [], []>} : vector<32x128xbf16>, vector<128x16xbf16>, vector<32x16xf32> -> vector<32x16xf32>
    %c928 = arith.constant 928 : index
    %c0_75 = arith.constant 0 : index
    %185 = vector.load %arg2[%c928, %c0_75] : memref<1040x128xbf16, #tpu.memory_space<vmem>>, vector<8x32xbf16>
    %c784 = arith.constant 784 : index
    %c0_76 = arith.constant 0 : index
    %186 = vector.load %arg2[%c784, %c0_76] : memref<1040x128xbf16, #tpu.memory_space<vmem>>, vector<16x64xbf16>
    %187 = arith.truncf %184 : vector<32x16xf32> to vector<32x16xbf16>
    %cst_77 = arith.constant dense<0.000000e+00> : vector<32x64xf32>
    %188 = tpu.matmul %187, %186, %cst_77 {dimension_numbers = #tpu.dot_dimension_numbers<[1], [0], [0], [1], [0, 0, 1, 1], [], []>} : vector<32x16xbf16>, vector<16x64xbf16>, vector<32x64xf32> -> vector<32x64xf32>
    %c184 = arith.constant 184 : index
    %c0_78 = arith.constant 0 : index
    %189 = vector.load %arg3[%c184, %c0_78] : memref<248x128xf32, #tpu.memory_space<vmem>>, vector<32x64xf32>
    %190 = arith.mulf %188, %189 : vector<32x64xf32>
    %191 = arith.truncf %190 : vector<32x64xf32> to vector<32x64xbf16>
    %cst_79 = arith.constant dense<0.000000e+00> : vector<8x64xf32>
    %192 = tpu.matmul %185, %191, %cst_79 {dimension_numbers = #tpu.dot_dimension_numbers<[1], [0], [0], [1], [0, 0, 1, 1], [], []>} : vector<8x32xbf16>, vector<32x64xbf16>, vector<8x64xf32> -> vector<8x64xf32>
    %c944 = arith.constant 944 : index
    %c0_80 = arith.constant 0 : index
    %193 = vector.load %arg2[%c944, %c0_80] : memref<1040x128xbf16, #tpu.memory_space<vmem>>, vector<32x8xbf16>
    %194 = arith.truncf %192 : vector<8x64xf32> to vector<8x64xbf16>
    %cst_81 = arith.constant dense<0.000000e+00> : vector<32x64xf32>
    %195 = tpu.matmul %193, %194, %cst_81 {dimension_numbers = #tpu.dot_dimension_numbers<[1], [0], [0], [1], [0, 0, 1, 1], [], []>} : vector<32x8xbf16>, vector<8x64xbf16>, vector<32x64xf32> -> vector<32x64xf32>
    %c216 = arith.constant 216 : index
    %c0_82 = arith.constant 0 : index
    %196 = vector.load %arg3[%c216, %c0_82] : memref<248x128xf32, #tpu.memory_space<vmem>>, vector<32x64xf32>
    %197 = arith.mulf %195, %196 : vector<32x64xf32>
    %c800 = arith.constant 800 : index
    %c0_83 = arith.constant 0 : index
    %198 = vector.load %arg2[%c800, %c0_83] : memref<1040x128xbf16, #tpu.memory_space<vmem>>, vector<64x16xbf16>
    %199 = arith.truncf %197 : vector<32x64xf32> to vector<32x64xbf16>
    %cst_84 = arith.constant dense<0.000000e+00> : vector<32x16xf32>
    %200 = tpu.matmul %199, %198, %cst_84 {dimension_numbers = #tpu.dot_dimension_numbers<[1], [0], [0], [1], [0, 0, 1, 1], [], []>} : vector<32x64xbf16>, vector<64x16xbf16>, vector<32x16xf32> -> vector<32x16xf32>
    %c976 = arith.constant 976 : index
    %c0_85 = arith.constant 0 : index
    %201 = vector.load %arg2[%c976, %c0_85] : memref<1040x128xbf16, #tpu.memory_space<vmem>>, vector<64x32xbf16>
    %c864 = arith.constant 864 : index
    %c0_86 = arith.constant 0 : index
    %202 = vector.load %arg2[%c864, %c0_86] : memref<1040x128xbf16, #tpu.memory_space<vmem>>, vector<16x32xbf16>
    %203 = arith.truncf %200 : vector<32x16xf32> to vector<32x16xbf16>
    %cst_87 = arith.constant dense<0.000000e+00> : vector<32x32xf32>
    %204 = tpu.matmul %203, %202, %cst_87 {dimension_numbers = #tpu.dot_dimension_numbers<[1], [0], [0], [1], [0, 0, 1, 1], [], []>} : vector<32x16xbf16>, vector<16x32xbf16>, vector<32x32xf32> -> vector<32x32xf32>
    %205 = arith.truncf %204 : vector<32x32xf32> to vector<32x32xbf16>
    %cst_88 = arith.constant dense<0.000000e+00> : vector<64x32xf32>
    %206 = tpu.matmul %201, %205, %cst_88 {dimension_numbers = #tpu.dot_dimension_numbers<[1], [0], [0], [1], [0, 0, 1, 1], [], []>} : vector<64x32xbf16>, vector<32x32xbf16>, vector<64x32xf32> -> vector<64x32xf32>
    %c0_89 = arith.constant 0 : index
    %c0_90 = arith.constant 0 : index
    %207 = vector.load %arg4[%c0_89, %c0_90] : memref<64x32xf32, #tpu.memory_space<vmem>>, vector<64x32xf32>
    tpu.vector_store %arg4[%c0_89, %c0_90], %206 {strides = array<i32>} : memref<64x32xf32, #tpu.memory_space<vmem>>, vector<64x32xf32>,
    return
  }
}

</mosaic_0001>

<bundles_post_ra>
// kernel: medsam_forward.1
= control target key start
LH: loop header
LB: loop body
LE: loop exit
PB: predicated region body
PF: predicated region fallthrough
CT: control target
= control target key end

     0   :  { %v2726_v1 = vmov 0   ;;  %vm131_vm0 = vcmask 523264   ;;  %s3249_s0 = inlined_call_operand.vmem [shape: f32[32,192], index: 0, kind: input, shape index: {}]   ;;  %s3250_s1 = inlined_call_operand.vmem [shape: f32[14,32], index: 1, kind: input, shape index: {}]   ;;  %s3251_s2 = inlined_call_operand.vmem [shape: bf16[1040,128], index: 2, kind: input, shape index: {}]   ;;  %s3252_s3 = inlined_call_operand.vmem [shape: f32[248,128], index: 3, kind: input, shape index: {}]   ;;  %s3253_s4 = inlined_call_operand.hbm [shape: f32[64,32], index: 4, kind: output, shape index: {}]  }
   0x1   :  { %v2584_v0 = vld [vmem:[%s3251_s2] sm:$0xff]   ;;  %138 = vmatprep.subr.bf16.mxu0 %v2726_v1  ;;  %v2585_v2 = vld [vmem:[%s3251_s2 + $0x8] sm:$0xff]   ;;  %v2586_v3 = vld [vmem:[%s3251_s2 + $0x10] sm:$0xff]  }
   0x2   :  { %139 = vmatpush1.bf16.msra.mxu0 %v2584_v0  ;;  %v2587_v4 = vld [vmem:[%s3251_s2 + $0x18] sm:$0xff]   ;;  %v20_v5 = vld [vmem:[%s3249_s0 + $0x8] sm:$0xff]  ;;  %v2588_v8 = vld [vmem:[%s3251_s2 + $0x20] sm:$0xff]  }
   0x3   :  { %140 = vmatprep.subr.bf16.mxu0 %v2726_v1  ;;  %v22_v6 = vld [vmem:[%s3249_s0 + $0x18] sm:$0xff]  ;;  %v2589_v9 = vld [vmem:[%s3251_s2 + $0x28] sm:$0xff]   ;;  %v2590_v10 = vld [vmem:[%s3251_s2 + $0x30] sm:$0xff]  }
   0x4   :  { %v52_v7 = vpack.c.bf16 %v22_v6, %v20_v5  ;;  %v2591_v11 = vld [vmem:[%s3251_s2 + $0x38] sm:$0xff]   ;;  %v2592_v12 = vld [vmem:[%s3251_s2 + $0x40] sm:$0xff]   ;;  %v2593_v13 = vld [vmem:[%s3251_s2 + $0x48] sm:$0xff]  }
   0x5   :  { %v2594_v14 = vld [vmem:[%s3251_s2 + $0x50] sm:$0xff]   ;;  %v2595_v15 = vld [vmem:[%s3251_s2 + $0x58] sm:$0xff]   ;;  %v19_v16 = vld [vmem:[%s3249_s0] sm:$0xff] }
   0x6   :  { %141 = vmatpush1.bf16.msra.mxu0 %v2585_v2  ;;  %2175 = vmatprep.mubr.msk.bf16.mxu0 %vm131_vm0, %v52_v7  ;;  %v21_v17 = vld [vmem:[%s3249_s0 + $0x10] sm:$0xff]  ;;  %v24_v18 = vld [vmem:[%s3249_s0 + $0x28] sm:$0xff]  ;;  %v26_v19 = vld [vmem:[%s3249_s0 + $0x38] sm:$0xff] }
   0x7   :  { %142 = vmatprep.subr.bf16.mxu0 %v2726_v1  ;;  %v51_v20 = vpack.c.bf16 %v21_v17, %v19_v16  ;;  %v54_v21 = vpack.c.bf16 %v26_v19, %v24_v18 }
   0xa   :  { %143 = vmatpush1.bf16.msra.mxu0 %v2586_v3 }
   0xb   :  { %144 = vmatprep.subr.bf16.mxu0 %v2726_v1 }
   0xe   :  { %145 = vmatpush1.bf16.msra.mxu0 %v2587_v4 }
   0xf   :  { %146 = vmatprep.subr.bf16.mxu0 %v2726_v1 }
  0x12   :  { %147 = vmatpush1.bf16.msra.mxu0 %v2588_v8 }
  0x13   :  { %148 = vmatprep.subr.bf16.mxu0 %v2726_v1 }
  0x16   :  { %149 = vmatpush1.bf16.msra.mxu0 %v2589_v9 }
  0x17   :  { %150 = vmatprep.subr.bf16.mxu0 %v2726_v1 }
  0x1a   :  { %151 = vmatpush1.bf16.msra.mxu0 %v2590_v10 }
  0x1b   :  { %152 = vmatprep.subr.bf16.mxu0 %v2726_v1 }
  0x1e   :  { %153 = vmatpush1.bf16.msra.mxu0 %v2591_v11 }
  0x1f   :  { %154 = vmatprep.subr.bf16.mxu0 %v2726_v1 }
  0x22   :  { %155 = vmatpush1.bf16.msra.mxu0 %v2592_v12 }
  0x23   :  { %156 = vmatprep.subr.bf16.mxu0 %v2726_v1 }
  0x26   :  { %157 = vmatpush1.bf16.msra.mxu0 %v2593_v13 }
  0x27   :  { %158 = vmatprep.subr.bf16.mxu0 %v2726_v1 }
  0x2a   :  { %159 = vmatpush1.bf16.msra.mxu0 %v2594_v14 }
  0x2b   :  { %160 = vmatprep.subr.bf16.mxu0 %v2726_v1 }
  0x2e   :  { %161 = vmatpush1.bf16.msra.mxu0 %v2595_v15 }
  0x2f   :  { %9 = vsyncpa [#allocation3], 0  ;;  %v23_v22 = vld [vmem:[%s3249_s0 + $0x20] sm:$0xff]  ;;  %v25_v23 = vld [vmem:[%s3249_s0 + $0x30] sm:$0xff]  ;;  %vm210_vm1 = vcmask 261120   ;;  %vm2728_vm2 = vmmov 0  }
  0x30   :  { %v53_v24 = vpack.c.bf16 %v25_v23, %v23_v22  ;;  %v2596_v25 = vld [vmem:[%s3251_s2 + $0x60] sm:$0xff]   ;;  %v2597_v26 = vld [vmem:[%s3251_s2 + $0x68] sm:$0xff]   ;;  %v57_v36 = vld [vmem:[%s3252_s3 + $0x10] sm:$0xff]  ;;  %vm578_vm3 = vcmask 259072   ;;  %vm939_vm4 = vcmask 1046528   ;;  %vm886_vm5 = vcmask 113664  }
  0x31   :  { %171 = vmatmul.mubr.bf16.vlgmr.msra.gmra.mrb[0].mxu0 %v51_v20  ;;  %2366 = vmatprep.subr.bf16.mxu1 %v2596_v25  ;;  %v55_v27 = vld [vmem:[%s3252_s3] sm:$0xff]  ;;  %v56_v29 = vld [vmem:[%s3252_s3 + $0x8] sm:$0xff]  ;;  %v58_v38 = vld [vmem:[%s3252_s3 + $0x18] sm:$0xff]  ;;  %vm1443_vm6 = vcmask 1043456   ;;  %vm1439_vm7 = vcmask 64512   ;;  %vm1498_vm8 = vcmask 15360  }
  0x32   :  { %2176 = vmatprep.mubr.msk.bf16.mxu0 %vm131_vm0, %v54_v21  ;;  %2367 = vmatpush3.bf16.msra.mxu1 %v2596_v25  ;;  %v2598_v45 = vld [vmem:[%s3251_s2 + $0x70] sm:$0xff]   ;;  %v2599_v46 = vld [vmem:[%s3251_s2 + $0x78] sm:$0xff]   ;;  %v2600_v47 = vld [vmem:[%s3251_s2 + $0x80] sm:$0xff]   ;;  %vm1505_vm9 = vcmask 1040384   ;;  %vm1688_vm10 = vcmask 130048   ;;  %s2729_s7 = smov [#allocation2]  }
  0x33   :  { %2368 = vmatprep.subr.bf16.mxu1 %v2597_v26  ;;  %v2601_v48 = vld [vmem:[%s3251_s2 + $0x88] sm:$0xff]   ;;  %v2602_v49 = vld [vmem:[%s3251_s2 + $0x90] sm:$0xff]   ;;  %v2603_v50 = vld [vmem:[%s3251_s2 + $0x98] sm:$0xff]   ;;  %s2152_s8 = sshll.u32 %s2729_s7, 4  ;;  %s2153_s8 = int_to_ptr.vmem [resolvable:$true] %s2152_s8 }
  0x34   :  { %v2604_v51 = vld [vmem:[%s3251_s2 + $0xa0] sm:$0xff]   ;;  %v2605_v52 = vld [vmem:[%s3251_s2 + $0xa8] sm:$0xff]   ;;  %p2707_p1 = scmp.lt.s32.totalorder %s2153_s8, %s2153_s8 }
  0x35   :  { %v2177_v53 = vld [vmem:[%s3252_s3 + $0x40] ss:$0 sm:$0xff] }
  0x36   :  { %2369 = vmatpush3.bf16.msra.mxu1 %v2597_v26 }
  0x37   :  { %2374 = vmatprep.subr.bf16.mxu1 %v2598_v45 }
  0x39   :  { %179 = vmatmul.mubr.bf16.gmra.mrb[4].mxu0 %v53_v24 }
 0x104   :  { %v172_v28 = vpop.f32.mrb[0].mxu0 }
 0x105   :  { %v174_v30 = vpop.f32.mrb[1].mxu0  ;;  %v2831_v32 = vadd.f32 %v172_v28, %v55_v27 }
 0x106   :  { %v175_v31 = vpop.f32.mrb[2].mxu0 }
 0x107   :  { %v2833_v33 = vadd.f32 %v175_v31, %v56_v29  ;;  %v177_v34 = vpop.f32.mrb[3].mxu0 }
 0x109   :  { %v191_v35 = vpack.c.bf16 %v2833_v33, %v2831_v32 }
 0x10b   :  { %2370 = vmatprep.mubr.msk.bf16.mxu1 %vm210_vm1, %v191_v35 }
 0x10c   :  { %v180_v37 = vpop.f32.mrb[4].mxu0 }
 0x10d   :  { %v182_v39 = vpop.f32.mrb[5].mxu0  ;;  %v2844_v41 = vadd.f32 %v180_v37, %v57_v36 }
 0x10e   :  { %v183_v40 = vpop.f32.mrb[6].mxu0  ;;  %v2607_v39 = vld [vmem:[%s3251_s2 + $0xb8] sm:$0xff]  }
 0x10f   :  { %v2846_v42 = vadd.f32 %v183_v40, %v58_v38  ;;  %v185_v43 = vpop.f32.mrb[7].mxu0  ;;  %v2606_v38 = vld [vmem:[%s3251_s2 + $0xb0] sm:$0xff]  }
 0x111   :  { %v192_v44 = vpack.c.bf16 %v2846_v42, %v2844_v41 }
 0x113   :  { %2371 = vmatmul.mubr.msk.bf16.vlgmr.msra.gmra.mrb[0].mxu1 %vm210_vm1, %v192_v44 }
 0x114   :  { %2375 = vmatpush3.bf16.msra.mxu1 %v2598_v45  ;;  %v2190_v45 = vld [vmem:[%s3252_s3 + $0x48] ss:$0 sm:$0xff] }
 0x115   :  { %2376 = vmatprep.subr.bf16.mxu1 %v2599_v46 }
 0x118   :  { %2377 = vmatpush3.bf16.msra.mxu1 %v2599_v46 }
 0x119   :  { %2378 = vmatprep.subr.bf16.mxu1 %v2600_v47 }
 0x11c   :  { %2379 = vmatpush3.bf16.msra.mxu1 %v2600_v47 }
 0x11d   :  { %2380 = vmatprep.subr.bf16.mxu1 %v2601_v48 }
 0x120   :  { %2381 = vmatpush3.bf16.msra.mxu1 %v2601_v48 }
 0x121   :  { %2382 = vmatprep.subr.bf16.mxu1 %v2602_v49 }
 0x124   :  { %2383 = vmatpush3.bf16.msra.mxu1 %v2602_v49 }
 0x125   :  { %2384 = vmatprep.subr.bf16.mxu1 %v2603_v50 }
 0x128   :  { %2385 = vmatpush3.bf16.msra.mxu1 %v2603_v50 }
 0x129   :  { %2386 = vmatprep.subr.bf16.mxu1 %v2604_v51 }
 0x12c   :  { %2387 = vmatpush3.bf16.msra.mxu1 %v2604_v51 }
 0x12d   :  { %2388 = vmatprep.subr.bf16.mxu1 %v2605_v52 }
 0x130   :  { %2389 = vmatpush3.bf16.msra.mxu1 %v2605_v52 }
 0x131   :  { %2394 = vmatprep.subr.bf16.mxu1 %v2606_v38 }
 0x1e6   :  { %v2372_v54 = vpop.f32.mrb[0].mxu1 }
 0x1e7   :  { %v260_v55 = vadd.f32 %v2372_v54, %v2177_v53  ;;  %v251_v56 = vpop.f32.mrb[1].mxu1 }
 0x1e8   :  { %v252_v57 = vadd.f32 %v2177_v53, %v251_v56  ;;  %v2373_v58 = vpop.f32.mrb[2].mxu1 }
 0x1e9   :  { %v272_v59 = vmul.f32 0.044715, %v260_v55  ;;  %v263_v60 = vadd.f32 %v2373_v58, %v2177_v53  ;;  %v254_v61 = vpop.f32.mrb[3].mxu1  ;;  %v268_v24 = vmul.f32 0.5, %v260_v55 }
 0x1ea   :  { %v270_v62 = vmul.f32 0.044715, %v252_v57  ;;  %v255_v63 = vadd.f32 %v2177_v53, %v254_v61  ;;  %v266_v27 = vmul.f32 0.5, %v252_v57 }
 0x1eb   :  { %v276_v0 = vmul.f32 %v272_v59, %v260_v55  ;;  %v273_v1 = vmul.f32 0.044715, %v263_v60  ;;  %v269_v25 = vmul.f32 0.5, %v263_v60  ;;  %v508_v59 = vld [vmem:[%s3252_s3 + $0x20] sm:$0xff] }
 0x1ec   :  { %v274_v2 = vmul.f32 %v270_v62, %v252_v57  ;;  %v271_v3 = vmul.f32 0.044715, %v255_v63  ;;  %v267_v28 = vmul.f32 0.5, %v255_v63  ;;  %v511_v62 = vld [vmem:[%s3252_s3 + $0x38] sm:$0xff] }
 0x1ed   :  { %v280_v4 = vmul.f32 %v276_v0, %v260_v55  ;;  %v277_v5 = vmul.f32 %v273_v1, %v263_v60 }
 0x1ee   :  { %v278_v6 = vmul.f32 %v274_v2, %v252_v57  ;;  %v275_v7 = vmul.f32 %v271_v3, %v255_v63  ;;  %v509_v2 = vld [vmem:[%s3252_s3 + $0x28] sm:$0xff] }
 0x1ef   :  { %v284_v8 = vadd.f32 %v280_v4, %v260_v55  ;;  %v281_v9 = vmul.f32 %v277_v5, %v263_v60 }
 0x1f0   :  { %v279_v10 = vmul.f32 %v275_v7, %v255_v63  ;;  %v282_v11 = vadd.f32 %v278_v6, %v252_v57 }
 0x1f1   :  { %v288_v12 = vmul.f32 0.7978846, %v284_v8  ;;  %v285_v13 = vadd.f32 %v281_v9, %v263_v60 }
 0x1f2   :  { %v283_v14 = vadd.f32 %v279_v10, %v255_v63  ;;  %v286_v15 = vmul.f32 0.7978846, %v282_v11 }
 0x1f3   :  { %2646 = vtanh.f32 %v288_v12  ;;  %v289_v16 = vmul.f32 0.7978846, %v285_v13 }
 0x1f4   :  { %v287_v17 = vmul.f32 0.7978846, %v283_v14  ;;  %2648 = vtanh.f32 %v286_v15 }
 0x1f5   :  { %2650 = vtanh.f32 %v289_v16 }
 0x1f6   :  { %2652 = vtanh.f32 %v287_v17 }
 0x1fd   :  { %v2647_v18 = vpop.eup %2646 }
 0x1fe   :  { %v2649_v19 = vpop.eup %2648  ;;  %v296_v20 = vadd.f32 1.0, %v2647_v18  ;;  %v516_v18 = vld [vmem:[%s3250_s1] sm:$0xff] }
 0x1ff   :  { %v2651_v21 = vpop.eup %2650  ;;  %v294_v22 = vadd.f32 1.0, %v2649_v19  ;;  %v517_v19 = vld [vmem:[%s3250_s1 + $0x8] sm:$0x3f] }
 0x200   :  { %v2653_v23 = vpop.eup %2652  ;;  %v297_v26 = vadd.f32 1.0, %v2651_v21  ;;  %v300_v30 = vmul.f32 %v296_v20, %v268_v24  ;;  %v518_v21 = vmul.f32 0.17677669, %v516_v18  ;;  %v523_v24 = vld [vmem:[%s3252_s3 + $0x88] sm:$0xff] }
 0x201   :  { %v295_v29 = vadd.f32 1.0, %v2653_v23  ;;  %v298_v34 = vmul.f32 %v294_v22, %v266_v27  ;;  %v519_v22 = vmul.f32 0.17677669, %v517_v19 }
 0x202   :  { %v301_v31 = vmul.f32 %v297_v26, %v269_v25  ;;  %v524_v26 = vld [vmem:[%s3252_s3 + $0x90] sm:$0x3f] }
 0x203   :  { %v299_v35 = vmul.f32 %v295_v29, %v267_v28  ;;  %v520_v23 = vpack.c.bf16 %v519_v22, %v518_v21 }
 0x204   :  { %v319_v36 = vpack.c.bf16 %v301_v31, %v300_v30 }
 0x205   :  { %v318_v37 = vpack.c.bf16 %v299_v35, %v298_v34 }
 0x207   :  { %2390 = vmatprep.mubr.bf16.mxu1 %v318_v37 }
 0x208   :  { %2391 = vmatmul.mubr.bf16.vlgmr.msra.gmra.mrb[4].mxu1 %v319_v36 }
 0x209   :  { %2395 = vmatpush3.bf16.msra.mxu1 %v2606_v38 }
 0x20a   :  { %2396 = vmatprep.subr.bf16.mxu1 %v2607_v39 }
 0x20d   :  { %2397 = vmatpush3.bf16.msra.mxu1 %v2607_v39 }
 0x2db   :  { %v2392_v40 = vpop.f32.mrb[4].mxu1 }
 0x2dc   :  { %v419_v43 = vadd.f32 %v2392_v40, %v2844_v41  ;;  %v402_v44 = vpop.f32.mrb[5].mxu1  ;;  %v2727_v41 = vmov 0.0  }
 0x2dd   :  { %v417_v46 = vadd.f32 %v402_v44, %v2831_v32  ;;  %v2393_v47 = vpop.f32.mrb[6].mxu1  ;;  %2410 = vmatprep.subr.bf16.mxu1 %v2727_v41  ;;  %2402 = vmatprep.subr.bf16.mxu0 %v2727_v41  ;;  %v2191_v32 = vld [vmem:[%s3252_s3 + $0x50] ss:$0 sm:$0xff] }
 0x2de   :  { %v420_v48 = vadd.f32 %v2393_v47, %v2846_v42  ;;  %v405_v49 = vpop.f32.mrb[7].mxu1  ;;  %v428_v51 = vadd.f32 %v2190_v45, %v419_v43  ;;  %2406 = vmatprep.mubr.msk.bf16.mxu0 %vm2728_vm2, %v2727_v41  ;;  %v510_v42 = vld [vmem:[%s3252_s3 + $0x30] sm:$0xff] }
 0x2df   :  { %v418_v50 = vadd.f32 %v405_v49, %v2833_v33  ;;  %v426_v53 = vadd.f32 %v2190_v45, %v417_v46 }
 0x2e0   :  { %v429_v52 = vadd.f32 %v2190_v45, %v420_v48 }
 0x2e1   :  { %v427_v54 = vadd.f32 %v2190_v45, %v418_v50 }
 0x2e2   :  { %v435_v55 = vpack.c.bf16 %v429_v52, %v428_v51 }
 0x2e3   :  { %v434_v56 = vpack.c.bf16 %v427_v54, %v426_v53 }
 0x2e5   :  { %2398 = vmatprep.mubr.msk.bf16.mxu1 %vm210_vm1, %v434_v56  ;;  %v2609_v56 = vld [vmem:[%s3251_s2 + $0xc8] sm:$0xff]  }
 0x2e6   :  { %2399 = vmatmul.mubr.msk.bf16.vlgmr.msra.gmra.mrb[8].mxu1 %vm210_vm1, %v435_v55  ;;  %v2608_v55 = vld [vmem:[%s3251_s2 + $0xc0] sm:$0xff]  }
 0x2e7   :  { %2414 = vmatprep.mubr.msk.bf16.mxu1 %vm2728_vm2, %v2727_v41 }
 0x3b9   :  { %v2400_v33 = vpop.f32.mrb[8].mxu1 }
 0x3ba   :  { %v2905_v57 = vadd.f32 %v2400_v33, %v2191_v32  ;;  %v493_v58 = vpop.f32.mrb[9].mxu1 }
 0x3bb   :  { %v2910_v60 = vadd.f32 %v2191_v32, %v493_v58  ;;  %v2401_v61 = vpop.f32.mrb[10].mxu1 }
 0x3bc   :  { %v514_v63 = vadd.f32 %v510_v42, %v2905_v57  ;;  %v2916_v0 = vadd.f32 %v2401_v61, %v2191_v32  ;;  %v496_v1 = vpop.f32.mrb[11].mxu1 }
 0x3bd   :  { %v512_v3 = vadd.f32 %v508_v59, %v2910_v60  ;;  %v2922_v4 = vadd.f32 %v2191_v32, %v496_v1  ;;  %v2611_v1 = vld [vmem:[%s3251_s2 + $0xd8] sm:$0xff]  }
 0x3be   :  { %v515_v5 = vadd.f32 %v511_v62, %v2916_v0  ;;  %v2928_v8 = vmul.f32 0.17677669, %v514_v63  ;;  %v600_v14 = vpack.c.bf16 %v2916_v0, %v2905_v57 }
 0x3bf   :  { %v513_v6 = vadd.f32 %v509_v2, %v2922_v4  ;;  %v599_v7 = vpack.c.bf16 %v2922_v4, %v2910_v60  ;;  %v2932_v10 = vmul.f32 0.17677669, %v512_v3  ;;  %v2612_v2 = vld [vmem:[%s3251_s2 + $0xe0] sm:$0xff]  }
 0x3c0   :  { %v2930_v9 = vmul.f32 0.17677669, %v515_v5  ;;  %v522_v17 = vpack.c.bf16 %v515_v5, %v514_v63  ;;  %v2610_v63 = vld [vmem:[%s3251_s2 + $0xd0] sm:$0xff]   ;;  %v2198_v5 = vld [vmem:[%s3252_s3 + $0x58] ss:$0 sm:$0xff] }
 0x3c1   :  { %v2934_v11 = vmul.f32 0.17677669, %v513_v6  ;;  %2411 = vmatpush3.bf16.msra.mxu1 %v599_v7  ;;  %v521_v12 = vpack.c.bf16 %v513_v6, %v512_v3  ;;  %v2613_v3 = vld [vmem:[%s3251_s2 + $0xe8] sm:$0xff]  }
 0x3c2   :  { %v822_v13 = vpack.c.bf16 %v2930_v9, %v2928_v8  ;;  %2412 = vmatprep.subr.bf16.mxu1 %v2727_v41  ;;  %v532_v20 = vsel %vm210_vm1, %v522_v17, 0  ;;  %v825_v8 = vld [vmem:[%s3252_s3 + $0xa0] sm:$0xff] }
 0x3c3   :  { %v529_v15 = vsel %vm210_vm1, %v521_v12, 0  ;;  %v821_v16 = vpack.c.bf16 %v2934_v11, %v2932_v10 }
 0x3c4   :  { %2403 = vmatpush3.bf16.xpose.msra.mxu0 %v529_v15 }
 0x3c5   :  { %2413 = vmatpush3.bf16.msra.mxu1 %v600_v14  ;;  %2404 = vmatprep.subr.bf16.mxu0 %v2727_v41 }
 0x3c6   :  { %2418 = vmatprep.subr.bf16.mxu1 %v2727_v41 }
 0x3cc   :  { %2405 = vmatpush3.bf16.xpose.msra.mxu0 %v532_v20 }
 0x3cd   :  { %2426 = vmatprep.subr.bf16.mxu0 %v2727_v41 }
 0x3d3   :  { %2407 = vmatmul.mubr.msk.bf16.vlgmr.msra.gmra.mrb[8].mxu0 %vm210_vm1, %v520_v23 }
 0x3d4   :  { %2434 = vmatprep.mubr.msk.bf16.mxu0 %vm2728_vm2, %v2727_v41  ;;  %2427 = vmatpush3.bf16.msra.mxu0 %v2610_v63 }
 0x3d5   :  { %2428 = vmatprep.subr.bf16.mxu0 %v2727_v41 }
 0x3d8   :  { %2429 = vmatpush3.bf16.msra.mxu0 %v2611_v1 }
 0x3d9   :  { %2430 = vmatprep.subr.bf16.mxu0 %v2727_v41 }
 0x3dc   :  { %2431 = vmatpush3.bf16.msra.mxu0 %v2612_v2 }
 0x3dd   :  { %2432 = vmatprep.subr.bf16.mxu0 %v2727_v41 }
 0x3e0   :  { %2433 = vmatpush3.bf16.msra.mxu0 %v2613_v3 }
 0x3e1   :  { %2466 = vmatprep.subr.bf16.mxu0 %v2727_v41 }
 0x4a6   :  { %v568_v25 = vpop.f32.mrb[8].mxu0 }
 0x4a7   :  { %v569_v27 = vadd.f32 %v568_v25, %v523_v24  ;;  %v2408_v28 = vpop.f32.mrb[9].mxu0 }
 0x4a8   :  { %v571_v29 = vpop.f32.mrb[10].mxu0 }
 0x4a9   :  { %v572_v30 = vadd.f32 %v571_v29, %v524_v26  ;;  %v2409_v31 = vpop.f32.mrb[11].mxu0  ;;  %v575_v34 = vsel %vm210_vm1, %v569_v27, -inf }
 0x4aa   :  { %576 = vmax.xlane.f32.xlu0 %v575_v34 }
 0x4ab   :  { %v579_v35 = vsel %vm578_vm3, %v572_v30, -inf }
 0x4ae   :  { %580 = vmax.xlane.f32.xlu0 %v579_v35 }
 0x537   :  { %v577_v36 = vpop.xlane.xlu0 %576 }
 0x538   :  { %v582_v37 = vsub.f32 %v569_v27, %v577_v36 }
 0x53a   :  { %v584_v38 = vmul.f32 1.442695, %v582_v37 }
 0x53b   :  { %v581_v39 = vpop.xlane.xlu0 %580 }
 0x53c   :  { %2654 = vpow2.f32 %v584_v38  ;;  %v583_v40 = vsub.f32 %v572_v30, %v581_v39  ;;  %v2207_v39 = vld [vmem:[%s3252_s3 + $0x60] ss:$0 sm:$0xff] }
 0x53e   :  { %v586_v43 = vmul.f32 1.442695, %v583_v40 }
 0x540   :  { %2656 = vpow2.f32 %v586_v43 }
 0x546   :  { %v2655_v44 = vpop.eup %2654 }
 0x547   :  { %v588_v45 = vsel %vm210_vm1, %v2655_v44, 0.0 }
 0x548   :  { %589 = vadd.xlane.f32.xlu1 %v588_v45 }
 0x54a   :  { %v2657_v46 = vpop.eup %2656 }
 0x54b   :  { %v591_v47 = vsel %vm578_vm3, %v2657_v46, 0.0 }
 0x54c   :  { %592 = vadd.xlane.f32.xlu1 %v591_v47 }
 0x5d5   :  { %v590_v48 = vpop.xlane.xlu1 %589 }
 0x5d6   :  { %2658 = vrcp.f32 %v590_v48 }
 0x5d9   :  { %v593_v49 = vpop.xlane.xlu1 %592 }
 0x5da   :  { %2660 = vrcp.f32 %v593_v49 }
 0x5e0   :  { %v2659_v50 = vpop.eup %2658 }
 0x5e1   :  { %v596_v52 = vmul.f32 %v2659_v50, %v2655_v44  ;;  %v824_v50 = vld [vmem:[%s3252_s3 + $0x98] sm:$0xff] }
 0x5e4   :  { %v2661_v51 = vpop.eup %2660 }
 0x5e5   :  { %v597_v53 = vmul.f32 %v2661_v51, %v2657_v46 }
 0x5e7   :  { %v598_v54 = vpack.c.bf16 %v597_v53, %v596_v52  ;;  %v826_v52 = vld [vmem:[%s3252_s3 + $0xa8] sm:$0xff] }
 0x5e9   :  { %2415 = vmatmul.mubr.msk.bf16.vlgmr.msra.gmra.mrb[12].mxu1 %vm210_vm1, %v598_v54  ;;  %v827_v54 = vld [vmem:[%s3252_s3 + $0xb0] sm:$0xff] }
 0x5ea   :  { %2422 = vmatprep.mubr.msk.bf16.mxu1 %vm2728_vm2, %v2727_v41  ;;  %2419 = vmatpush3.bf16.msra.mxu1 %v2608_v55 }
 0x5eb   :  { %2420 = vmatprep.subr.bf16.mxu1 %v2727_v41 }
 0x5ee   :  { %2421 = vmatpush3.bf16.msra.mxu1 %v2609_v56 }
 0x6bc   :  { %v638_v32 = vpop.f32.mrb[12].mxu1 }
 0x6bd   :  { %v2416_v33 = vpop.f32.mrb[13].mxu1  ;;  %v645_v58 = vadd.f32 %v638_v32, %v516_v18 }
 0x6be   :  { %v641_v42 = vpop.f32.mrb[14].mxu1 }
 0x6bf   :  { %v646_v59 = vadd.f32 %v641_v42, %v517_v19  ;;  %v2417_v61 = vpop.f32.mrb[15].mxu1 }
 0x6c1   :  { %v651_v62 = vpack.c.bf16 %v646_v59, %v645_v58 }
 0x6c3   :  { %2423 = vmatmul.mubr.msk.bf16.vlgmr.msra.gmra.mrb[16].mxu1 %vm210_vm1, %v651_v62 }
 0x6c4   :  { %2440 = vmatprep.mubr.msk.bf16.mxu1 %vm210_vm1, %v821_v16 }
 0x796   :  { %v706_v6 = vpop.f32.mrb[16].mxu1 }
 0x797   :  { %v707_v7 = vadd.f32 %v2198_v5, %v706_v6  ;;  %v2424_v10 = vpop.f32.mrb[17].mxu1 }
 0x798   :  { %v709_v11 = vpop.f32.mrb[18].mxu1 }
 0x799   :  { %v715_v12 = vmul.f32 0.044715, %v707_v7  ;;  %v710_v14 = vadd.f32 %v2198_v5, %v709_v11  ;;  %v2425_v15 = vpop.f32.mrb[19].mxu1  ;;  %v713_v28 = vmul.f32 0.5, %v707_v7 }
 0x79b   :  { %v717_v16 = vmul.f32 %v715_v12, %v707_v7  ;;  %v716_v17 = vmul.f32 0.044715, %v710_v14  ;;  %v714_v29 = vmul.f32 0.5, %v710_v14 }
 0x79d   :  { %v719_v18 = vmul.f32 %v717_v16, %v707_v7  ;;  %v718_v19 = vmul.f32 %v716_v17, %v710_v14 }
 0x79f   :  { %v721_v20 = vadd.f32 %v719_v18, %v707_v7  ;;  %v720_v21 = vmul.f32 %v718_v19, %v710_v14 }
 0x7a1   :  { %v723_v22 = vmul.f32 0.7978846, %v721_v20  ;;  %v722_v23 = vadd.f32 %v720_v21, %v710_v14 }
 0x7a3   :  { %2662 = vtanh.f32 %v723_v22  ;;  %v724_v24 = vmul.f32 0.7978846, %v722_v23 }
 0x7a5   :  { %2664 = vtanh.f32 %v724_v24 }
 0x7ad   :  { %v2663_v25 = vpop.eup %2662 }
 0x7ae   :  { %v727_v26 = vadd.f32 1.0, %v2663_v25 }
 0x7af   :  { %v2665_v27 = vpop.eup %2664 }
 0x7b0   :  { %v728_v30 = vadd.f32 1.0, %v2665_v27  ;;  %v729_v31 = vmul.f32 %v727_v26, %v713_v28 }
 0x7b2   :  { %v730_v34 = vmul.f32 %v728_v30, %v714_v29 }
 0x7b4   :  { %v739_v35 = vpack.c.bf16 %v730_v34, %v729_v31 }
 0x7b6   :  { %2435 = vmatmul.mubr.msk.bf16.vlgmr.msra.gmra.mrb[12].mxu0 %vm131_vm0, %v739_v35 }
 0x7b7   :  { %2468 = vmatprep.mubr.msk.bf16.mxu0 %vm2728_vm2, %v2727_v41 }
 0x889   :  { %v801_v36 = vpop.f32.mrb[12].mxu0 }
 0x88a   :  { %v808_v37 = vadd.f32 %v801_v36, %v645_v58  ;;  %v2436_v38 = vpop.f32.mrb[13].mxu0 }
 0x88b   :  { %v804_v40 = vpop.f32.mrb[14].mxu0  ;;  %v2614_v38 = vld [vmem:[%s3251_s2 + $0xf0] sm:$0xff]  }
 0x88c   :  { %v809_v43 = vadd.f32 %v804_v40, %v646_v59  ;;  %v2437_v44 = vpop.f32.mrb[15].mxu0  ;;  %v815_v45 = vadd.f32 %v2207_v39, %v808_v37  ;;  %v2615_v40 = vld [vmem:[%s3251_s2 + $0xf8] sm:$0xff]  }
 0x88d   :  { %v2617_v44 = vld [vmem:[%s3251_s2 + $0x108] sm:$0xff]  }
 0x88e   :  { %v816_v46 = vadd.f32 %v2207_v39, %v809_v43  ;;  %v2616_v43 = vld [vmem:[%s3251_s2 + $0x100] sm:$0xff]  }
 0x890   :  { %v3005_v47 = vpack.c.bf16 %v816_v46, %v815_v45  ;;  %v2618_v45 = vld [vmem:[%s3251_s2 + $0x110] sm:$0xff]  }
 0x892   :  { %2574 = vmatprep.subr.msk.bf16.mxu1 %vm210_vm1, %v3005_v47  ;;  %v835_v48 = vsel %vm210_vm1, %v3005_v47, 0  ;;  %v940_v49 = vsel %vm939_vm4, %v3005_v47, 0 }
 0x893   :  { %2439 = vmatpush3.bf16.xpose.msra.mxu1 %v835_v48 }
 0x894   :  { %2575 = vmatprep.subr.msk.bf16.mxu1 %vm939_vm4, %v3005_v47 }
 0x89a   :  { %2441 = vmatmul.mubr.msk.bf16.vlgmr.msra.gmra.mrb[20].mxu1 %vm210_vm1, %v822_v13 }
 0x89b   :  { %2445 = vmatpush3.bf16.msra.mxu1 %v940_v49 }
 0x89c   :  { %2450 = vmatprep.subr.bf16.mxu1 %v2727_v41 }
 0x96d   :  { %v2442_v51 = vpop.f32.mrb[20].mxu1 }
 0x96e   :  { %v871_v53 = vpop.f32.mrb[21].mxu1  ;;  %v880_v56 = vadd.f32 %v2442_v51, %v826_v52 }
 0x96f   :  { %v872_v9 = vadd.f32 %v871_v53, %v824_v50  ;;  %v2443_v13 = vpop.f32.mrb[22].mxu1 }
 0x970   :  { %v874_v55 = vpop.f32.mrb[23].mxu1  ;;  %v883_v42 = vadd.f32 %v2443_v13, %v827_v54  ;;  %v893_v59 = vsel %vm886_vm5, %v880_v56, -inf  ;;  %v2212_v13 = vld [vmem:[%s3252_s3 + $0x68] ss:$0 sm:$0xff] }
 0x971   :  { %v875_v32 = vadd.f32 %v874_v55, %v825_v8  ;;  %v887_v33 = vsel %vm886_vm5, %v872_v9, -inf }
 0x972   :  { %888 = vmax.xlane.f32.xlu0 %v887_v33  ;;  %v896_v61 = vsel %vm886_vm5, %v883_v42, -inf }
 0x973   :  { %v890_v58 = vsel %vm886_vm5, %v875_v32, -inf }
 0x974   :  { %891 = vmax.xlane.f32.xlu1 %v890_v58 }
 0x976   :  { %894 = vmax.xlane.f32.xlu0 %v893_v59 }
 0x978   :  { %897 = vmax.xlane.f32.xlu1 %v896_v61 }
 0x9ff   :  { %v889_v62 = vpop.xlane.xlu0 %888 }
 0xa00   :  { %v899_v63 = vsub.f32 %v872_v9, %v889_v62 }
 0xa01   :  { %v892_v1 = vpop.xlane.xlu1 %891 }
 0xa02   :  { %v903_v2 = vmul.f32 1.442695, %v899_v63  ;;  %v900_v3 = vsub.f32 %v875_v32, %v892_v1 }
 0xa03   :  { %v895_v5 = vpop.xlane.xlu0 %894 }
 0xa04   :  { %2666 = vpow2.f32 %v903_v2  ;;  %v905_v6 = vmul.f32 1.442695, %v900_v3  ;;  %v901_v7 = vsub.f32 %v880_v56, %v895_v5 }
 0xa05   :  { %v898_v10 = vpop.xlane.xlu1 %897 }
 0xa06   :  { %2668 = vpow2.f32 %v905_v6  ;;  %v907_v11 = vmul.f32 1.442695, %v901_v7  ;;  %v902_v12 = vsub.f32 %v883_v42, %v898_v10 }
 0xa08   :  { %2670 = vpow2.f32 %v907_v11  ;;  %v909_v14 = vmul.f32 1.442695, %v902_v12 }
 0xa0a   :  { %2672 = vpow2.f32 %v909_v14 }
 0xa0e   :  { %v2667_v15 = vpop.eup %2666 }
 0xa0f   :  { %v911_v16 = vsel %vm886_vm5, %v2667_v15, 0.0 }
 0xa10   :  { %v2669_v17 = vpop.eup %2668  ;;  %912 = vadd.xlane.f32.xlu0 %v911_v16  ;;  %v2216_v16 = vld [vmem:[%s3252_s3 + $0x70] ss:$0 sm:$0xff] }
 0xa11   :  { %v914_v18 = vsel %vm886_vm5, %v2669_v17, 0.0 }
 0xa12   :  { %v2671_v19 = vpop.eup %2670  ;;  %915 = vadd.xlane.f32.xlu1 %v914_v18 }
 0xa13   :  { %v917_v20 = vsel %vm886_vm5, %v2671_v19, 0.0 }
 0xa14   :  { %v2673_v21 = vpop.eup %2672  ;;  %918 = vadd.xlane.f32.xlu0 %v917_v20 }
 0xa15   :  { %v920_v22 = vsel %vm886_vm5, %v2673_v21, 0.0 }
 0xa16   :  { %921 = vadd.xlane.f32.xlu1 %v920_v22 }
 0xa9d   :  { %v913_v23 = vpop.xlane.xlu0 %912 }
 0xa9e   :  { %2674 = vrcp.f32 %v913_v23 }
 0xa9f   :  { %v916_v24 = vpop.xlane.xlu1 %915 }
 0xaa0   :  { %2676 = vrcp.f32 %v916_v24  ;;  %v2620_v24 = vld [vmem:[%s3251_s2 + $0x120] sm:$0xff]  }
 0xaa1   :  { %v919_v25 = vpop.xlane.xlu0 %918 }
 0xaa2   :  { %2678 = vrcp.f32 %v919_v25  ;;  %v2221_v25 = vld [vmem:[%s3252_s3 + $0x78] ss:$0 sm:$0xff] }
 0xaa3   :  { %v922_v26 = vpop.xlane.xlu1 %921 }
 0xaa4   :  { %2680 = vrcp.f32 %v922_v26 }
 0xaa8   :  { %v2675_v27 = vpop.eup %2674 }
 0xaa9   :  { %v927_v29 = vmul.f32 %v2675_v27, %v2667_v15  ;;  %v2619_v15 = vld [vmem:[%s3251_s2 + $0x118] sm:$0xff]  }
 0xaaa   :  { %v2677_v28 = vpop.eup %2676 }
 0xaab   :  { %v928_v30 = vmul.f32 %v2677_v28, %v2669_v17  ;;  %v1141_v28 = vld [vmem:[%s3251_s2 + $0x1b8] sm:$0x1] }
 0xaac   :  { %v2679_v31 = vpop.eup %2678 }
 0xaad   :  { %v931_v34 = vpack.c.bf16 %v928_v30, %v927_v29  ;;  %v929_v36 = vmul.f32 %v2679_v31, %v2671_v19  ;;  %v2621_v31 = vld [vmem:[%s3251_s2 + $0x128] sm:$0xff]  }
 0xaae   :  { %v2681_v35 = vpop.eup %2680 }
 0xaaf   :  { %v930_v37 = vmul.f32 %v2681_v35, %v2673_v21  ;;  %2446 = vmatprep.mubr.msk.bf16.mxu1 %vm886_vm5, %v931_v34 }
 0xab1   :  { %v932_v39 = vpack.c.bf16 %v930_v37, %v929_v36 }
 0xab3   :  { %2447 = vmatmul.mubr.msk.bf16.vlgmr.msra.gmra.mrb[24].mxu1 %vm886_vm5, %v932_v39 }
 0xab4   :  { %2451 = vmatpush3.bf16.msra.mxu1 %v2614_v38  ;;  %2454 = vmatprep.mubr.msk.bf16.mxu1 %vm2728_vm2, %v2727_v41 }
 0xab5   :  { %2452 = vmatprep.subr.bf16.mxu1 %v2727_v41 }
 0xab8   :  { %2453 = vmatpush3.bf16.msra.mxu1 %v2615_v40 }
 0xab9   :  { %2458 = vmatprep.subr.bf16.mxu1 %v2727_v41 }
 0xabb   :  { %2455 = vmatmul.mubr.msk.bf16.vlgmr.msra.gmra.mrb[28].mxu1 %vm210_vm1, %v3005_v47 }
 0xabc   :  { %2462 = vmatprep.mubr.msk.bf16.mxu1 %vm2728_vm2, %v2727_v41  ;;  %2459 = vmatpush3.bf16.msra.mxu1 %v2616_v43 }
 0xabd   :  { %2460 = vmatprep.subr.bf16.mxu1 %v2727_v41 }
 0xac0   :  { %2461 = vmatpush3.bf16.msra.mxu1 %v2617_v44 }
 0xac1   :  { %2472 = vmatprep.subr.bf16.mxu1 %v2618_v45 }
 0xb86   :  { %v2448_v46 = vpop.f32.mrb[24].mxu1 }
 0xb87   :  { %v976_v47 = vpop.f32.mrb[25].mxu1  ;;  %v993_v49 = vadd.f32 %v2448_v46, %v2905_v57 }
 0xb88   :  { %v2449_v48 = vpop.f32.mrb[26].mxu1  ;;  %v991_v52 = vadd.f32 %v976_v47, %v2910_v60 }
 0xb89   :  { %v994_v50 = vadd.f32 %v2449_v48, %v2916_v0  ;;  %v979_v51 = vpop.f32.mrb[27].mxu1 }
 0xb8a   :  { %v992_v53 = vadd.f32 %v979_v51, %v2922_v4 }
 0xb8b   :  { %v1194_v8 = vpack.c.bf16 %v994_v50, %v993_v49 }
 0xb8c   :  { %v1193_v9 = vpack.c.bf16 %v992_v53, %v991_v52 }
 0xb8e   :  { %v1050_v54 = vpop.f32.mrb[28].mxu1 }
 0xb8f   :  { %v1051_v55 = vadd.f32 %v2212_v13, %v1050_v54  ;;  %v2456_v56 = vpop.f32.mrb[29].mxu1 }
 0xb90   :  { %v1053_v32 = vpop.f32.mrb[30].mxu1 }
 0xb91   :  { %v1059_v33 = vmul.f32 0.044715, %v1051_v55  ;;  %v1054_v42 = vadd.f32 %v2212_v13, %v1053_v32  ;;  %v2457_v57 = vpop.f32.mrb[31].mxu1  ;;  %v1057_v6 = vmul.f32 0.5, %v1051_v55 }
 0xb93   :  { %v1061_v58 = vmul.f32 %v1059_v33, %v1051_v55  ;;  %v1060_v0 = vmul.f32 0.044715, %v1054_v42  ;;  %v1058_v7 = vmul.f32 0.5, %v1054_v42 }
 0xb95   :  { %v1063_v59 = vmul.f32 %v1061_v58, %v1051_v55  ;;  %v1062_v61 = vmul.f32 %v1060_v0, %v1054_v42 }
 0xb97   :  { %v1065_v60 = vadd.f32 %v1063_v59, %v1051_v55  ;;  %v1064_v62 = vmul.f32 %v1062_v61, %v1054_v42 }
 0xb99   :  { %v1067_v4 = vmul.f32 0.7978846, %v1065_v60  ;;  %v1066_v63 = vadd.f32 %v1064_v62, %v1054_v42 }
 0xb9b   :  { %2682 = vtanh.f32 %v1067_v4  ;;  %v1068_v1 = vmul.f32 0.7978846, %v1066_v63 }
 0xb9d   :  { %2684 = vtanh.f32 %v1068_v1 }
 0xba5   :  { %v2683_v2 = vpop.eup %2682 }
 0xba6   :  { %v1071_v3 = vadd.f32 1.0, %v2683_v2 }
 0xba7   :  { %v2685_v5 = vpop.eup %2684 }
 0xba8   :  { %v1072_v10 = vadd.f32 1.0, %v2685_v5  ;;  %v1073_v11 = vmul.f32 %v1071_v3, %v1057_v6 }
 0xbaa   :  { %v1074_v12 = vmul.f32 %v1072_v10, %v1058_v7 }
 0xbac   :  { %v1079_v14 = vpack.c.bf16 %v1074_v12, %v1073_v11 }
 0xbae   :  { %2463 = vmatmul.mubr.msk.bf16.vlgmr.msra.gmra.mrb[32].mxu1 %vm210_vm1, %v1079_v14  ;;  %v1437_v14 = vld [vmem:[%s3251_s2 + $0x140] sm:$0xf] }
 0xbaf   :  { %2473 = vmatpush3.bf16.msra.mxu1 %v2618_v45  ;;  %2476 = vmatprep.mubr.msk.bf16.mxu1 %vm210_vm1, %v1193_v9  ;;  %v2622_v45 = vld [vmem:[%s3251_s2 + $0x130] sm:$0xff]  }
 0xbb0   :  { %2474 = vmatprep.subr.bf16.mxu1 %v2619_v15 }
 0xbb3   :  { %2475 = vmatpush3.bf16.msra.mxu1 %v2619_v15  ;;  %v1445_v15 = vsel %vm1443_vm6, %v1437_v14, 0 }
 0xbb4   :  { %2492 = vmatprep.subr.bf16.mxu1 %v2727_v41 }
 0xbb6   :  { %2477 = vmatmul.mubr.msk.bf16.vlgmr.msra.gmra.mrb[36].mxu1 %vm210_vm1, %v1194_v8  ;;  %v2623_v8 = vld [vmem:[%s3251_s2 + $0x138] sm:$0xff]  }
 0xbb7   :  { %2494 = vmatprep.mubr.msk.bf16.mxu1 %vm2728_vm2, %v2727_v41  ;;  %2493 = vmatpush3.bf16.msra.mxu1 %v1445_v15 }
 0xc81   :  { %v1134_v17 = vpop.f32.mrb[32].mxu1 }
 0xc82   :  { %v2464_v18 = vpop.f32.mrb[33].mxu1  ;;  %v1135_v20 = vadd.f32 %v2216_v16, %v1134_v17 }
 0xc83   :  { %v1137_v19 = vpop.f32.mrb[34].mxu1 }
 0xc84   :  { %v1138_v21 = vadd.f32 %v2216_v16, %v1137_v19  ;;  %v2465_v22 = vpop.f32.mrb[35].mxu1 }
 0xc86   :  { %v1142_v23 = vpack.c.bf16 %v1138_v21, %v1135_v20 }
 0xc88   :  { %v1147_v26 = vsel %vm939_vm4, %v1142_v23, 0 }
 0xc89   :  { %2467 = vmatpush3.bf16.msra.mxu0 %v1147_v26  ;;  %v2478_v27 = vpop.f32.mrb[36].mxu1  ;;  %v2626_v26 = vld [vmem:[%s3251_s2 + $0x148] sm:$0xff]  }
 0xc8a   :  { %v1261_v29 = vadd.f32 %v2478_v27, %v2221_v25  ;;  %v1252_v30 = vpop.f32.mrb[37].mxu1  ;;  %2480 = vmatprep.subr.bf16.mxu0 %v2620_v24  ;;  %v2627_v27 = vld [vmem:[%s3251_s2 + $0x150] sm:$0xff]  }
 0xc8b   :  { %v1253_v34 = vadd.f32 %v2221_v25, %v1252_v30  ;;  %v2479_v35 = vpop.f32.mrb[38].mxu1  ;;  %v2630_v30 = vld [vmem:[%s3251_s2 + $0x168] sm:$0xff]  }
 0xc8c   :  { %v1273_v36 = vmul.f32 0.044715, %v1261_v29  ;;  %v1264_v37 = vadd.f32 %v2479_v35, %v2221_v25  ;;  %2469 = vmatmul.mubr.msk.bf16.vlgmr.msra.gmra.mrb[16].mxu0 %vm886_vm5, %v1141_v28  ;;  %v1255_v38 = vpop.f32.mrb[39].mxu1  ;;  %v1269_v62 = vmul.f32 0.5, %v1261_v29  ;;  %v2628_v28 = vld [vmem:[%s3251_s2 + $0x158] sm:$0xff]  }
 0xc8d   :  { %v1271_v39 = vmul.f32 0.044715, %v1253_v34  ;;  %v1256_v40 = vadd.f32 %v2221_v25, %v1255_v38  ;;  %2481 = vmatpush3.bf16.msra.mxu0 %v2620_v24  ;;  %v1267_v1 = vmul.f32 0.5, %v1253_v34  ;;  %v2624_v25 = vld [vmem:[%s3251_s2 + $0x1c0] sm:$0xff]  }
 0xc8e   :  { %v1277_v43 = vmul.f32 %v1273_v36, %v1261_v29  ;;  %v1274_v44 = vmul.f32 0.044715, %v1264_v37  ;;  %2482 = vmatprep.subr.bf16.mxu0 %v2621_v31  ;;  %v1270_v4 = vmul.f32 0.5, %v1264_v37 }
 0xc8f   :  { %v1275_v46 = vmul.f32 %v1271_v39, %v1253_v34  ;;  %v1272_v47 = vmul.f32 0.044715, %v1256_v40  ;;  %v1268_v2 = vmul.f32 0.5, %v1256_v40 }
 0xc90   :  { %v1281_v48 = vmul.f32 %v1277_v43, %v1261_v29  ;;  %v1278_v49 = vmul.f32 %v1274_v44, %v1264_v37  ;;  %v2632_v43 = vld [vmem:[%s3251_s2 + $0x178] sm:$0xff]   ;;  %v2633_v44 = vld [vmem:[%s3251_s2 + $0x180] sm:$0xff]  }
 0xc91   :  { %v1279_v50 = vmul.f32 %v1275_v46, %v1253_v34  ;;  %v1276_v51 = vmul.f32 %v1272_v47, %v1256_v40  ;;  %2483 = vmatpush3.bf16.msra.mxu0 %v2621_v31  ;;  %v2631_v31 = vld [vmem:[%s3251_s2 + $0x170] sm:$0xff]  }
 0xc92   :  { %v1285_v52 = vadd.f32 %v1281_v48, %v1261_v29  ;;  %v1282_v53 = vmul.f32 %v1278_v49, %v1264_v37  ;;  %2484 = vmatprep.subr.bf16.mxu0 %v2622_v45  ;;  %v2629_v29 = vld [vmem:[%s3251_s2 + $0x160] sm:$0xff]  }
 0xc93   :  { %v1283_v9 = vadd.f32 %v1279_v50, %v1253_v34  ;;  %v1280_v13 = vmul.f32 %v1276_v51, %v1256_v40 }
 0xc94   :  { %v1289_v54 = vmul.f32 0.7978846, %v1285_v52  ;;  %v1286_v55 = vadd.f32 %v1282_v53, %v1264_v37 }
 0xc95   :  { %v1287_v56 = vmul.f32 0.7978846, %v1283_v9  ;;  %v1284_v32 = vadd.f32 %v1280_v13, %v1256_v40  ;;  %2485 = vmatpush3.bf16.msra.mxu0 %v2622_v45  ;;  %v2625_v40 = vld [vmem:[%s3251_s2 + $0x1c8] sm:$0xff]   ;;  %v2226_v45 = vld [vmem:[%s3252_s3 + $0x80] ss:$0 sm:$0xff] }
 0xc96   :  { %2686 = vtanh.f32 %v1289_v54  ;;  %v1290_v33 = vmul.f32 0.7978846, %v1286_v55  ;;  %2486 = vmatprep.subr.bf16.mxu0 %v2623_v8 }
 0xc97   :  { %2688 = vtanh.f32 %v1287_v56  ;;  %v1288_v42 = vmul.f32 0.7978846, %v1284_v32 }
 0xc98   :  { %2690 = vtanh.f32 %v1290_v33 }
 0xc99   :  { %2692 = vtanh.f32 %v1288_v42  ;;  %2487 = vmatpush3.bf16.msra.mxu0 %v2623_v8 }
 0xc9a   :  { %2504 = vmatprep.subr.bf16.mxu0 %v2626_v26 }
 0xca0   :  { %v2687_v57 = vpop.eup %2686 }
 0xca1   :  { %v2689_v58 = vpop.eup %2688  ;;  %v1297_v0 = vadd.f32 1.0, %v2687_v57 }
 0xca2   :  { %v2691_v59 = vpop.eup %2690  ;;  %v1295_v61 = vadd.f32 1.0, %v2689_v58 }
 0xca3   :  { %v2693_v60 = vpop.eup %2692  ;;  %v1298_v63 = vadd.f32 1.0, %v2691_v59  ;;  %v1301_v5 = vmul.f32 %v1297_v0, %v1269_v62 }
 0xca4   :  { %v1296_v3 = vadd.f32 1.0, %v2693_v60  ;;  %v1299_v7 = vmul.f32 %v1295_v61, %v1267_v1 }
 0xca5   :  { %v1302_v6 = vmul.f32 %v1298_v63, %v1270_v4 }
 0xca6   :  { %v1300_v10 = vmul.f32 %v1296_v3, %v1268_v2 }
 0xca7   :  { %v1312_v11 = vpack.c.bf16 %v1302_v6, %v1301_v5 }
 0xca8   :  { %v1311_v12 = vpack.c.bf16 %v1300_v10, %v1299_v7 }
 0xcaa   :  { %2488 = vmatprep.mubr.msk.bf16.mxu0 %vm131_vm0, %v1311_v12 }
 0xcab   :  { %2489 = vmatmul.mubr.msk.bf16.vlgmr.msra.gmra.mrb[20].mxu0 %vm131_vm0, %v1312_v11 }
 0xcac   :  { %2505 = vmatpush3.bf16.msra.mxu0 %v2626_v26 }
 0xcad   :  { %2506 = vmatprep.subr.bf16.mxu0 %v2627_v27 }
 0xcb0   :  { %2507 = vmatpush3.bf16.msra.mxu0 %v2627_v27 }
 0xcb1   :  { %2508 = vmatprep.subr.bf16.mxu0 %v2628_v28 }
 0xcb4   :  { %2509 = vmatpush3.bf16.msra.mxu0 %v2628_v28 }
 0xcb5   :  { %2510 = vmatprep.subr.bf16.mxu0 %v2629_v29 }
 0xcb8   :  { %2511 = vmatpush3.bf16.msra.mxu0 %v2629_v29  ;;  %v2634_v29 = vld [vmem:[%s3251_s2 + $0x188] sm:$0xff]  }
 0xcb9   :  { %2512 = vmatprep.subr.bf16.mxu0 %v2630_v30 }
 0xcbc   :  { %2513 = vmatpush3.bf16.msra.mxu0 %v2630_v30 }
 0xcbd   :  { %2514 = vmatprep.subr.bf16.mxu0 %v2631_v31 }
 0xcc0   :  { %2515 = vmatpush3.bf16.msra.mxu0 %v2631_v31 }
 0xcc1   :  { %2516 = vmatprep.subr.bf16.mxu0 %v2632_v43 }
 0xcc4   :  { %2517 = vmatpush3.bf16.msra.mxu0 %v2632_v43 }
 0xcc5   :  { %2518 = vmatprep.subr.bf16.mxu0 %v2633_v44 }
 0xcc8   :  { %2519 = vmatpush3.bf16.msra.mxu0 %v2633_v44  ;;  %v1744_v44 = vld [vmem:[%s3252_s3 + $0xb8] sm:$0xff] }
 0xd5f   :  { %v1183_v16 = vpop.f32.mrb[16].mxu0 }
 0xd60   :  { %v1438_v17 = vpack.c.bf16 %v1183_v16, %v1183_v16  ;;  %v2470_v18 = vpop.f32.mrb[17].mxu0 }
 0xd61   :  { %v1186_v19 = vpop.f32.mrb[18].mxu0 }
 0xd62   :  { %v2471_v20 = vpop.f32.mrb[19].mxu0  ;;  %2495 = vmatmul.mubr.msk.bf16.vlgmr.msra.gmra.mrb[40].mxu1 %vm1439_vm7, %v1438_v17 }
 0xd63   :  { %2500 = vmatprep.mubr.msk.bf16.mxu1 %vm1498_vm8, %v2624_v25 }
 0xd7e   :  { %v2490_v21 = vpop.f32.mrb[20].mxu0 }
 0xd7f   :  { %v1382_v22 = vpop.f32.mrb[21].mxu0  ;;  %v1391_v46 = vadd.f32 %v2490_v21, %v2226_v45 }
 0xd80   :  { %v2491_v23 = vpop.f32.mrb[22].mxu0  ;;  %v1383_v47 = vadd.f32 %v2226_v45, %v1382_v22 }
 0xd81   :  { %v1385_v24 = vpop.f32.mrb[23].mxu0  ;;  %v1394_v48 = vadd.f32 %v2491_v23, %v2226_v45  ;;  %v1403_v50 = vmul.f32 0.044715, %v1391_v46  ;;  %v1399_v6 = vmul.f32 0.5, %v1391_v46 }
 0xd82   :  { %v1386_v49 = vadd.f32 %v2226_v45, %v1385_v24  ;;  %v1401_v51 = vmul.f32 0.044715, %v1383_v47  ;;  %v1397_v10 = vmul.f32 0.5, %v1383_v47  ;;  %v1745_v45 = vld [vmem:[%s3252_s3 + $0xc0] sm:$0xff] }
 0xd83   :  { %v1404_v52 = vmul.f32 0.044715, %v1394_v48  ;;  %v1407_v8 = vmul.f32 %v1403_v50, %v1391_v46  ;;  %v1400_v14 = vmul.f32 0.5, %v1394_v48 }
 0xd84   :  { %v1402_v53 = vmul.f32 0.044715, %v1386_v49  ;;  %v1405_v9 = vmul.f32 %v1401_v51, %v1383_v47  ;;  %v1398_v17 = vmul.f32 0.5, %v1386_v49 }
 0xd85   :  { %v1408_v13 = vmul.f32 %v1404_v52, %v1394_v48  ;;  %v1411_v55 = vmul.f32 %v1407_v8, %v1391_v46  ;;  %v1677_v8 = vld [vmem:[%s3251_s2 + $0x1d0] sm:$0xf] }
 0xd86   :  { %v1406_v54 = vmul.f32 %v1402_v53, %v1386_v49  ;;  %v1409_v56 = vmul.f32 %v1405_v9, %v1383_v47  ;;  %v2635_v9 = vld [vmem:[%s3251_s2 + $0x1d8] sm:$0xff]  }
 0xd87   :  { %v1412_v32 = vmul.f32 %v1408_v13, %v1394_v48  ;;  %v1415_v42 = vadd.f32 %v1411_v55, %v1391_v46 }
 0xd88   :  { %v1410_v33 = vmul.f32 %v1406_v54, %v1386_v49  ;;  %v1413_v57 = vadd.f32 %v1409_v56, %v1383_v47 }
 0xd89   :  { %v1416_v58 = vadd.f32 %v1412_v32, %v1394_v48  ;;  %v1419_v59 = vmul.f32 0.7978846, %v1415_v42  ;;  %v2636_v42 = vld [vmem:[%s3251_s2 + $0x1e0] sm:$0xff]  }
 0xd8a   :  { %v1414_v0 = vadd.f32 %v1410_v33, %v1386_v49  ;;  %v1417_v61 = vmul.f32 0.7978846, %v1413_v57  ;;  %v2638_v57 = vld [vmem:[%s3251_s2 + $0x198] sm:$0xff]  }
 0xd8b   :  { %v1420_v60 = vmul.f32 0.7978846, %v1416_v58  ;;  %2694 = vtanh.f32 %v1419_v59  ;;  %v2639_v58 = vld [vmem:[%s3251_s2 + $0x1a0] sm:$0xff]  }
 0xd8c   :  { %v1418_v62 = vmul.f32 0.7978846, %v1414_v0  ;;  %2696 = vtanh.f32 %v1417_v61  ;;  %v2640_v0 = vld [vmem:[%s3251_s2 + $0x1a8] sm:$0xff]  }
 0xd8d   :  { %2698 = vtanh.f32 %v1420_v60  ;;  %v1872_v61 = vld [vmem:[%s3252_s3 + $0xe8] sm:$0xff]  ;;  %v1873_v60 = vld [vmem:[%s3252_s3 + $0xf0] sm:$0xff] }
 0xd8e   :  { %2700 = vtanh.f32 %v1418_v62 }
 0xd95   :  { %v2695_v4 = vpop.eup %2694 }
 0xd96   :  { %v2697_v63 = vpop.eup %2696  ;;  %v1427_v3 = vadd.f32 1.0, %v2695_v4  ;;  %v1870_v4 = vld [vmem:[%s3252_s3 + $0xd8] sm:$0xff] }
 0xd97   :  { %v2699_v1 = vpop.eup %2698  ;;  %v1425_v5 = vadd.f32 1.0, %v2697_v63  ;;  %v1871_v63 = vld [vmem:[%s3252_s3 + $0xe0] sm:$0xff] }
 0xd98   :  { %v2701_v2 = vpop.eup %2700  ;;  %v1428_v7 = vadd.f32 1.0, %v2699_v1  ;;  %v1431_v12 = vmul.f32 %v1427_v3, %v1399_v6 }
 0xd99   :  { %v1426_v11 = vadd.f32 1.0, %v2701_v2  ;;  %v1429_v16 = vmul.f32 %v1425_v5, %v1397_v10 }
 0xd9a   :  { %v1432_v20 = vmul.f32 %v1428_v7, %v1400_v14 }
 0xd9b   :  { %v1430_v23 = vmul.f32 %v1426_v11, %v1398_v17 }
 0xe35   :  { %v1481_v34 = vpop.f32.mrb[40].mxu1 }
 0xe36   :  { %v1487_v35 = vpack.c.bf16 %v1481_v34, %v1481_v34  ;;  %v2496_v36 = vpop.f32.mrb[41].mxu1 }
 0xe37   :  { %v1484_v37 = vpop.f32.mrb[42].mxu1 }
 0xe38   :  { %v1507_v38 = vsel %vm1505_vm9, %v1487_v35, 0  ;;  %v2497_v39 = vpop.f32.mrb[43].mxu1  ;;  %2576 = vmatprep.subr.msk.bf16.mxu1 %vm1505_vm9, %v1487_v35 }
 0xe39   :  { %2499 = vmatpush3.bf16.msra.mxu1 %v1507_v38  ;;  %v1746_v39 = vld [vmem:[%s3252_s3 + $0xc8] sm:$0xff] }
 0xe3a   :  { %2524 = vmatprep.subr.bf16.mxu1 %v2634_v29 }
 0xe3c   :  { %2501 = vmatmul.mubr.msk.bf16.vlgmr.msra.gmra.mrb[44].mxu1 %vm1498_vm8, %v2625_v40  ;;  %v1747_v40 = vld [vmem:[%s3252_s3 + $0xd0] sm:$0xff] }
 0xe3d   :  { %2525 = vmatpush3.bf16.msra.mxu1 %v2634_v29  ;;  %v2645_v29 = vld [vmem:[%s3251_s2 + $0x200] sm:$0xff]  }
 0xe3e   :  { %2530 = vmatprep.subr.bf16.mxu1 %v2727_v41 }
 0xf0f   :  { %v2502_v15 = vpop.f32.mrb[44].mxu1 }
 0xf10   :  { %v1560_v18 = vmul.f32 %v2502_v15, %v1431_v12  ;;  %v1543_v19 = vpop.f32.mrb[45].mxu1  ;;  %v2641_v12 = vld [vmem:[%s3251_s2 + $0x1b0] sm:$0xff]  }
 0xf11   :  { %v1558_v21 = vmul.f32 %v1543_v19, %v1429_v16  ;;  %v2503_v22 = vpop.f32.mrb[46].mxu1  ;;  %2556 = vmatprep.subr.bf16.mxu0 %v2641_v12 }
 0xf12   :  { %v1561_v24 = vmul.f32 %v2503_v22, %v1432_v20  ;;  %v1546_v25 = vpop.f32.mrb[47].mxu1  ;;  %v2642_v20 = vld [vmem:[%s3251_s2 + $0x1e8] sm:$0xff]  }
 0xf13   :  { %v1559_v26 = vmul.f32 %v1546_v25, %v1430_v23 }
 0xf14   :  { %v1579_v27 = vpack.c.bf16 %v1561_v24, %v1560_v18 }
 0xf15   :  { %v1578_v28 = vpack.c.bf16 %v1559_v26, %v1558_v21 }
 0xf17   :  { %2520 = vmatprep.mubr.bf16.mxu0 %v1578_v28  ;;  %v2644_v28 = vld [vmem:[%s3251_s2 + $0x1f8] sm:$0xff]  }
 0xf18   :  { %2521 = vmatmul.mubr.bf16.vlgmr.msra.gmra.mrb[24].mxu0 %v1579_v27  ;;  %v2643_v27 = vld [vmem:[%s3251_s2 + $0x1f0] sm:$0xff]  }
 0xf19   :  { %2557 = vmatpush3.bf16.msra.mxu0 %v2641_v12 }
 0xfeb   :  { %v2522_v30 = vpop.f32.mrb[24].mxu0 }
 0xfec   :  { %v1662_v31 = vpop.f32.mrb[25].mxu0 }
 0xfed   :  { %v2523_v34 = vpop.f32.mrb[26].mxu0 }
 0xfee   :  { %v1681_v35 = vpack.c.bf16 %v2523_v34, %v2522_v30  ;;  %v1665_v36 = vpop.f32.mrb[27].mxu0 }
 0xfef   :  { %v1680_v37 = vpack.c.bf16 %v1665_v36, %v1662_v31 }
 0xff1   :  { %2526 = vmatprep.mubr.msk.bf16.mxu1 %vm1688_vm10, %v1680_v37 }
 0xff2   :  { %2527 = vmatmul.mubr.msk.bf16.vlgmr.msra.gmra.mrb[48].mxu1 %vm1688_vm10, %v1681_v35 }
 0xff3   :  { %2534 = vmatprep.mubr.msk.bf16.mxu1 %vm2728_vm2, %v2727_v41 }
0x10c5   :  { %v2528_v38 = vpop.f32.mrb[48].mxu1 }
0x10c6   :  { %v1729_v43 = vpop.f32.mrb[49].mxu1  ;;  %v1750_v47 = vmul.f32 %v2528_v38, %v1746_v39 }
0x10c7   :  { %v2529_v46 = vpop.f32.mrb[50].mxu1  ;;  %v1748_v50 = vmul.f32 %v1744_v44, %v1729_v43 }
0x10c8   :  { %v1751_v48 = vmul.f32 %v2529_v46, %v1747_v40  ;;  %v1732_v49 = vpop.f32.mrb[51].mxu1 }
0x10c9   :  { %v1749_v51 = vmul.f32 %v1745_v45, %v1732_v49 }
0x10ca   :  { %v1753_v52 = vpack.c.bf16 %v1751_v48, %v1750_v47 }
0x10cb   :  { %v1752_v53 = vpack.c.bf16 %v1749_v51, %v1748_v50 }
0x10cd   :  { %2531 = vmatpush3.bf16.msra.mxu1 %v1752_v53 }
0x10ce   :  { %2532 = vmatprep.subr.bf16.mxu1 %v2727_v41  ;;  %v2637_v41 = vld [vmem:[%s3251_s2 + $0x190] sm:$0xff]   ;;  %s2702_s2 = scalar_lea.vmem %s2153_s8, 1024 }
0x10cf   :  { %p2703_p0 = scmp.ne.s32.totalorder %s2153_s8, %s2702_s2  ;;  %p2708_p2 = scmp.lt.s32.totalorder %s2702_s2, %s2702_s2 }
0x10d1   :  { %2533 = vmatpush3.bf16.msra.mxu1 %v1753_v52  ;;  %p2709_p3 = por %p2708_p2, %p2707_p1 }
0x10d3   :  { %p2710_p4 = pnand %p2709_p3, %p2703_p0 }
0x10d4   :  { %2535 = vmatmul.mubr.msk.bf16.vlgmr.msra.gmra.mrb[52].mxu1 %vm210_vm1, %v1677_v8 }
0x10d5   :  { %2540 = vmatprep.mubr.msk.bf16.mxu1 %vm1439_vm7, %v2635_v9 }
0x11a7   :  { %v1791_v13 = vpop.f32.mrb[52].mxu1 }
0x11a8   :  { %v1801_v54 = vpack.c.bf16 %v1791_v13, %v1791_v13  ;;  %v2536_v55 = vpop.f32.mrb[53].mxu1 }
0x11a9   :  { %v1794_v56 = vpop.f32.mrb[54].mxu1 }
0x11aa   :  { %v1819_v32 = vsel %vm1443_vm6, %v1801_v54, 0  ;;  %v2537_v33 = vpop.f32.mrb[55].mxu1  ;;  %2577 = vmatprep.subr.msk.bf16.mxu1 %vm1443_vm6, %v1801_v54 }
0x11ab   :  { %2539 = vmatpush3.bf16.msra.mxu1 %v1819_v32 }
0x11ac   :  { %2544 = vmatprep.subr.bf16.mxu1 %v2637_v41 }
0x11ae   :  { %2541 = vmatmul.mubr.msk.bf16.vlgmr.msra.gmra.mrb[56].mxu1 %vm1439_vm7, %v2636_v42 }
0x11af   :  { %2545 = vmatpush3.bf16.msra.mxu1 %v2637_v41 }
0x11b0   :  { %2546 = vmatprep.subr.bf16.mxu1 %v2638_v57 }
0x11b3   :  { %2547 = vmatpush3.bf16.msra.mxu1 %v2638_v57 }
0x11b4   :  { %2548 = vmatprep.subr.bf16.mxu1 %v2639_v58 }
0x11b7   :  { %2549 = vmatpush3.bf16.msra.mxu1 %v2639_v58 }
0x11b8   :  { %2550 = vmatprep.subr.bf16.mxu1 %v2640_v0 }
0x11bb   :  { %2551 = vmatpush3.bf16.msra.mxu1 %v2640_v0 }
0x1281   :  { %v2542_v59 = vpop.f32.mrb[56].mxu1 }
0x1282   :  { %v1855_v62 = vpop.f32.mrb[57].mxu1  ;;  %v1876_v2 = vmul.f32 %v2542_v59, %v1872_v61 }
0x1283   :  { %v2543_v1 = vpop.f32.mrb[58].mxu1  ;;  %v1874_v6 = vmul.f32 %v1870_v4, %v1855_v62 }
0x1284   :  { %v1877_v3 = vmul.f32 %v2543_v1, %v1873_v60  ;;  %v1858_v5 = vpop.f32.mrb[59].mxu1 }
0x1285   :  { %v1875_v7 = vmul.f32 %v1871_v63, %v1858_v5 }
0x1286   :  { %v1887_v10 = vpack.c.bf16 %v1877_v3, %v1876_v2 }
0x1287   :  { %v1886_v11 = vpack.c.bf16 %v1875_v7, %v1874_v6 }
0x1289   :  { %2552 = vmatprep.mubr.msk.bf16.mxu1 %vm131_vm0, %v1886_v11 }
0x128a   :  { %2553 = vmatmul.mubr.msk.bf16.vlgmr.msra.gmra.mrb[60].mxu1 %vm131_vm0, %v1887_v10 }
0x135d   :  { %v2554_v14 = vpop.f32.mrb[60].mxu1 }
0x135e   :  { %v1952_v15 = vpop.f32.mrb[61].mxu1 }
0x135f   :  { %v2555_v16 = vpop.f32.mrb[62].mxu1 }
0x1360   :  { %v1978_v17 = vpack.c.bf16 %v2555_v16, %v2554_v14  ;;  %v1955_v18 = vpop.f32.mrb[63].mxu1 }
0x1361   :  { %v1977_v19 = vpack.c.bf16 %v1955_v18, %v1952_v15 }
0x1363   :  { %2558 = vmatprep.mubr.msk.bf16.mxu0 %vm1688_vm10, %v1977_v19 }
0x1364   :  { %2559 = vmatmul.mubr.msk.bf16.vlgmr.msra.gmra.mrb[28].mxu0 %vm1688_vm10, %v1978_v17 }
0x1365   :  { %2566 = vmatprep.mubr.msk.bf16.mxu0 %vm210_vm1, %v2642_v20 }
0x1437   :  { %v2560_v21 = vpop.f32.mrb[28].mxu0 }
0x1438   :  { %v2025_v22 = vpop.f32.mrb[29].mxu0 }
0x1439   :  { %v2561_v23 = vpop.f32.mrb[30].mxu0 }
0x143a   :  { %v2041_v24 = vpack.c.bf16 %v2561_v23, %v2560_v21  ;;  %v2028_v25 = vpop.f32.mrb[31].mxu0 }
0x143b   :  { %v2040_v26 = vpack.c.bf16 %v2028_v25, %v2025_v22 }
0x143d   :  { %2562 = vmatprep.subr.bf16.mxu0 %v2040_v26 }
0x143e   :  { %2563 = vmatpush3.bf16.msra.mxu0 %v2040_v26 }
0x143f   :  { %2564 = vmatprep.subr.bf16.mxu0 %v2041_v24 }
0x1442   :  { %2565 = vmatpush3.bf16.msra.mxu0 %v2041_v24 }
0x1445   :  { %2567 = vmatmul.mubr.msk.bf16.vlgmr.msra.gmra.mrb[32].mxu0 %vm210_vm1, %v2643_v27 }
0x1446   :  { %2570 = vmatprep.mubr.msk.bf16.mxu0 %vm210_vm1, %v2644_v28 }
0x144d   :  { %2571 = vmatmul.mubr.msk.bf16.gmra.mrb[36].mxu0 %vm210_vm1, %v2645_v29 }
0x1518   :  { %v2568_v30 = vpop.f32.mrb[32].mxu0 }
0x1519   :  { %2141 = vst.msk [vmem:[#allocation2 + $0x10] sm:$0xff] %vm210_vm1, %v2568_v30  ;;  %v2108_v31 = vpop.f32.mrb[33].mxu0 }
0x151a   :  { %2139 = vst.msk [vmem:[#allocation2] sm:$0xff] %vm210_vm1, %v2108_v31  ;;  %v2569_v34 = vpop.f32.mrb[34].mxu0 }
0x151b   :  { %2142 = vst.msk [vmem:[#allocation2 + $0x18] sm:$0xff] %vm210_vm1, %v2569_v34  ;;  %v2111_v35 = vpop.f32.mrb[35].mxu0 }
0x151c   :  { %2140 = vst.msk [vmem:[#allocation2 + $0x8] sm:$0xff] %vm210_vm1, %v2111_v35 }
0x1520   :  { %v2572_v36 = vpop.f32.mrb[36].mxu0 }
0x1521   :  { %2145 = vst.msk [vmem:[#allocation2 + $0x30] sm:$0xff] %vm210_vm1, %v2572_v36  ;;  %v2124_v37 = vpop.f32.mrb[37].mxu0 }
0x1522   :  { %2143 = vst.msk [vmem:[#allocation2 + $0x20] sm:$0xff] %vm210_vm1, %v2124_v37  ;;  %v2573_v38 = vpop.f32.mrb[38].mxu0 }
0x1523   :  { %2146 = vst.msk [vmem:[#allocation2 + $0x38] sm:$0xff] %vm210_vm1, %v2573_v38  ;;  %v2127_v39 = vpop.f32.mrb[39].mxu0 }
0x1524   :  { %2144 = vst.msk [vmem:[#allocation2 + $0x28] sm:$0xff] %vm210_vm1, %v2127_v39 }
0x1525   :  { %2713 = shalt.err (!%p2710_p4)
}
0x1526   :  { %s2714_s10 = scalar_lea.hbm %s3253_s4, 1024 }
0x1527   :  { %p2715_p5 = scmp.ne.s32.totalorder %s3253_s4, %s2714_s10  ;;  %p2718_p6 = scmp.lt.u32.totalorder %s2714_s10, %s3253_s4 }
0x1529   :  { %p2720_p7 = pnand %p2718_p6, %p2715_p5 }
0x152b   :  { %2723 = shalt.err (!%p2720_p7)
}
0x152c   :  { %s2730_s15 = smov 128   ;;  %s2731_s16 = smov 8  }
0x152d   :  { %2158 = dma.vmem_to_hbm [thread:$0]  %s2153_s8, 1024, %s3253_s4, [#allocation3], %s2730_s15, %s2730_s15, %s2731_s16  }
0x152e   :  { %2724 = dma.done.wait [#allocation3], 1024  }
0x152f   :  { %2725 = vsyncadd [#allocation3], 4294966272 }
0x1530   :  { %2162 = vsyncpa [#allocation3], 1 }

</bundles_post_ra>
